<compile_context>
chip_gen: v7x
topology: tpu7x:2x2x1
jax: 0.10.0
libtpu: 0.0.40
codegen_flags: <defaults>
</compile_context>

<pallas_src>
import functools

import jax
import jax.numpy as jnp
from jax import lax
from jax.experimental import pallas as pl
from jax.experimental.pallas import tpu as pltpu


def _round_up(x, m):
    return (x + m - 1) // m * m


# ----------------------------------------------------------------------------
# Kernel
# ----------------------------------------------------------------------------
def fire_kernel(x_ref, wsq_ref, bsq_ref, wcomb_ref, bcomb_ref, out_ref, *, H, W):
    # x_ref: (NB, Hp, Wp, Cin) block of NB images (spatial padded to x8).
    NB, Hp, Wp, Cin = x_ref.shape
    Sq = wsq_ref.shape[1]          # padded squeeze width
    Eout = out_ref.shape[3]        # padded expand width (E1+E3, lane-dense)

    # ---- squeeze: 1x1 conv as one matmul (+ folded BN bias) + ReLU ---------
    x = x_ref[...].reshape(NB * Hp * Wp, Cin)
    s = jnp.dot(x, wsq_ref[...], preferred_element_type=jnp.float32)
    s = jnp.maximum(s + bsq_ref[...], 0.0).astype(x.dtype)
    s4 = s.reshape(NB, Hp, Wp, Sq)

    # Zero the spatially padded rows/cols so the 3x3 halo of real pixels sees
    # zeros (matches the conv's zero padding).  Only emitted when H/W padded.
    if Hp != H or Wp != W:
        ri = lax.broadcasted_iota(jnp.int32, (NB, Hp, Wp, Sq), 1)
        ci = lax.broadcasted_iota(jnp.int32, (NB, Hp, Wp, Sq), 2)
        s4 = jnp.where((ri < H) & (ci < W), s4, jnp.zeros_like(s4))

    # ---- im2col of the zero-bordered squeeze activations (values only) -----
    zrow = jnp.zeros((NB, 1, Wp, Sq), s4.dtype)
    zcol = jnp.zeros((NB, Hp + 2, 1, Sq), s4.dtype)
    sp = jnp.concatenate([zrow, s4, zrow], axis=1)            # (NB,Hp+2,Wp  ,Sq)
    sp = jnp.concatenate([zcol, sp, zcol], axis=2)            # (NB,Hp+2,Wp+2,Sq)
    col = jnp.concatenate(
        [sp[:, ky:ky + Hp, kx:kx + Wp, :] for ky in range(3) for kx in range(3)],
        axis=-1).reshape(NB * Hp * Wp, 9 * Sq)                # (NB*Hp*Wp, 9*Sq)

    # ---- fused expand: ONE matmul covers both the 1x1 and 3x3 branches -----
    y = jnp.dot(col, wcomb_ref[...], preferred_element_type=jnp.float32)
    y = jnp.maximum(y + bcomb_ref[...], 0.0)
    out_ref[...] = y.reshape(NB, Hp, Wp, Eout).astype(out_ref.dtype)


# ----------------------------------------------------------------------------
# Wrapper helpers
# ----------------------------------------------------------------------------
def fold_bn(w, b, gamma, beta, mean, var, eps=1e-5):
    """Fold BatchNorm (eval mode, running stats) into conv weight/bias."""
    scale = gamma / jnp.sqrt(var + eps)                 # (Cout,)
    w_f = w * scale[:, None, None, None]                # (Cout, Cin, kh, kw)
    b_f = (b - mean) * scale + beta                     # (Cout,)
    return w_f, b_f


def _pad_squeeze_lanes_default():
    # Pad Sq to 128 lanes on v6e/v7x (MXU slack is huge, aligns the 9-way
    # im2col lane concat); skip on v5-class and older chips where the weaker
    # MXU would become the bottleneck.
    try:
        kind = jax.devices()[0].device_kind.lower()
    except Exception:
        return True
    return not any(g in kind for g in ("v2", "v3", "v4", "v5"))


def _default_images_per_step(N):
    if N <= 1:
        return 1
    # Keep >= 2 grid steps so dual-TensorCore chips (v7x) get >= 2 work items.
    return max(1, min(8, N // 2))


def _clamp_images_per_step(nb, Hp, Wp, Cin, Sq_pad, Eout_pad, in_bytes,
                           out_bytes, budget_bytes=12 << 20):
    """Keep per-step VMEM (double-buffered I/O + weights + intermediates)
    under a conservative budget that fits every generation's default scoped
    VMEM limit (incl. v7x's smaller 64 MiB physical VMEM)."""
    def est(n):
        hw = n * Hp * Wp
        io = 2 * hw * Cin * in_bytes + 2 * hw * Eout_pad * out_bytes
        wts = 2 * (Cin * Sq_pad + 9 * Sq_pad * Eout_pad + Sq_pad + Eout_pad) * in_bytes
        tmp = (hw * Sq_pad * (4 + in_bytes)          # squeeze acc + bf16 copy
               + hw * 9 * Sq_pad * in_bytes          # im2col matrix
               + hw * Eout_pad * 4)                  # expand f32 accumulator
        return io + wts + tmp
    while nb > 1 and est(nb) > budget_bytes:
        nb //= 2
    return nb


# ----------------------------------------------------------------------------
# Production entry point: NHWC in, NHWC out (keep activations NHWC/bf16
# end-to-end across layers — no layout transposes here).
# ----------------------------------------------------------------------------
def fire_pallas_nhwc(x_nhwc, params, *, compute_dtype=jnp.bfloat16,
                     out_dtype=jnp.bfloat16, images_per_step=None,
                     pad_squeeze_lanes=None):
    N, H, W, Cin = x_nhwc.shape

    # Fold BN into each conv (eval-mode running stats).
    wsq, bsq = fold_bn(params["sq_w"], params["sq_b"], *params["sq_bn"])
    we1, be1 = fold_bn(params["e1_w"], params["e1_b"], *params["e1_bn"])
    we3, be3 = fold_bn(params["e3_w"], params["e3_b"], *params["e3_bn"])

    Sq, E1, E3 = wsq.shape[0], we1.shape[0], we3.shape[0]
    Eout = E1 + E3

    if pad_squeeze_lanes is None:
        pad_squeeze_lanes = _pad_squeeze_lanes_default()
    Sq_pad = _round_up(Sq, 128) if pad_squeeze_lanes else Sq
    # Sub-128 output lanes would lower to masked partial stores; real Fire
    # configs already have Eout >= 128 (multiples of 128), so this only pads
    # the small-channel/toy cases.
    Eout_pad = 128 if Eout < 128 else Eout

    # Squeeze 1x1 weight as a (Cin, Sq_pad) matmul operand (zero lane padding,
    # zero bias padding -> padded squeeze channels are exactly 0).
    wsq_m = (jnp.zeros((Cin, Sq_pad), jnp.float32)
             .at[:, :Sq].set(jnp.transpose(wsq[:, :, 0, 0], (1, 0)))
             .astype(compute_dtype))
    bsq_m = jnp.zeros((1, Sq_pad), jnp.float32).at[0, :Sq].set(bsq)

    # Combined expand weight (9*Sq_pad, Eout_pad): 3x3 taps flattened into K
    # (tap t = 3*ky + kx); the 1x1 expand weight occupies the centre-tap rows
    # (t == 4) of the first E1 output columns.  All padded rows/cols are zero,
    # so padded squeeze lanes / padded output lanes contribute nothing.
    we1_m = jnp.transpose(we1[:, :, 0, 0], (1, 0))                    # (Sq, E1)
    we3_m = jnp.transpose(we3, (2, 3, 1, 0)).reshape(9, Sq, E3)       # (9, Sq, E3)
    taps = []
    for t in range(9):
        blk = jnp.zeros((Sq_pad, Eout_pad), jnp.float32)
        blk = blk.at[:Sq, E1:E1 + E3].set(we3_m[t])
        if t == 4:
            blk = blk.at[:Sq, :E1].set(we1_m)
        taps.append(blk)
    wcomb = jnp.concatenate(taps, axis=0).astype(compute_dtype)
    bcomb = (jnp.zeros((1, Eout_pad), jnp.float32)
             .at[0, :Eout].set(jnp.concatenate([be1, be3])))

    # Spatial pad W/H to multiples of 8 so the in-kernel reshapes stay on
    # (8,128) tile boundaries (no per-step relayout copies); batch pad so NB
    # divides N.  At real SqueezeNet sizes this is one cheap pad vs a per-step
    # relayout; the padded border is re-zeroed inside the kernel.
    Hp, Wp = _round_up(H, 8), _round_up(W, 8)
    NB = images_per_step if images_per_step is not None else _default_images_per_step(N)
    NB = _clamp_images_per_step(NB, Hp, Wp, Cin, Sq_pad, Eout_pad,
                                jnp.dtype(compute_dtype).itemsize,
                                jnp.dtype(out_dtype).itemsize)
    Np = _round_up(N, NB)

    x = x_nhwc.astype(compute_dtype)
    if (Np, Hp, Wp) != (N, H, W):
        x = jnp.pad(x, ((0, Np - N), (0, Hp - H), (0, Wp - W), (0, 0)))

    full = lambda a: pl.BlockSpec(a.shape, lambda n: (0,) * a.ndim)

    # Note: constant operands (weights/biases) could be single-buffered
    # (pipeline_mode=pl.Buffered(1)) for a little extra VMEM headroom on v7x;
    # left at default double-buffering for portability.
    # TODO(synk): for N == 1 on v7x, add a second "parallel" grid axis over
    # spatial row tiles (1-row halo) so both TensorCores get work.
    out_full = pl.pallas_call(
        functools.partial(fire_kernel, H=H, W=W),
        out_shape=jax.ShapeDtypeStruct((Np, Hp, Wp, Eout_pad), out_dtype),
        grid_spec=pltpu.PrefetchScalarGridSpec(
            num_scalar_prefetch=0,
            grid=(Np // NB,),
            in_specs=[
                pl.BlockSpec((NB, Hp, Wp, Cin), lambda n: (n, 0, 0, 0)),
                full(wsq_m), full(bsq_m),
                full(wcomb), full(bcomb),
            ],
            out_specs=pl.BlockSpec((NB, Hp, Wp, Eout_pad),
                                   lambda n: (n, 0, 0, 0)),
        ),
        compiler_params=pltpu.CompilerParams(
            dimension_semantics=("parallel",)),
    )(x, wsq_m, bsq_m, wcomb, bcomb)

    if (Np, Hp, Wp, Eout_pad) != (N, H, W, Eout):
        out_full = out_full[:N, :H, :W, :Eout]
    return out_full


# ----------------------------------------------------------------------------
# Compatibility wrapper for PyTorch's NCHW layout (used by the test below).
# In a full network, call fire_pallas_nhwc layer-to-layer instead: each of the
# two transposes here re-streams every activation byte through HBM.
# ----------------------------------------------------------------------------
def fire_pallas(x_nchw, params, **kwargs):
    x_nhwc = jnp.transpose(x_nchw, (0, 2, 3, 1))
    out_nhwc = fire_pallas_nhwc(x_nhwc, params, **kwargs)
    return jnp.transpose(out_nhwc, (0, 3, 1, 2))


# ----------------------------------------------------------------------------
# Pure-JAX f32 reference matching the PyTorch forward (eval-mode BN)
# ----------------------------------------------------------------------------
def fire_reference(x_nchw, params):
    def conv(x, w, b, pad):
        y = lax.conv_general_dilated(x, w, (1, 1), pad,
                                     dimension_numbers=("NCHW", "OIHW", "NCHW"))
        return y + b[None, :, None, None]

    def bn(x, gamma, beta, mean, var, eps=1e-5):
        scale = gamma / jnp.sqrt(var + eps)
        return (x - mean[None, :, None, None]) * scale[None, :, None, None] \
               + beta[None, :, None, None]

    s = jax.nn.relu(bn(conv(x_nchw, params["sq_w"], params["sq_b"], "VALID"),
                       *params["sq_bn"]))
    e1 = jax.nn.relu(bn(conv(s, params["e1_w"], params["e1_b"], "VALID"),
                        *params["e1_bn"]))
    e3 = jax.nn.relu(bn(conv(s, params["e3_w"], params["e3_b"],
                             ((1, 1), (1, 1))), *params["e3_bn"]))
    return jnp.concatenate([e1, e3], axis=1)


def make_params(key, inplanes, squeeze_planes, e1_planes, e3_planes):
    ks = jax.random.split(key, 12)

    def bn_params(kk, c):
        k1, k2, k3, k4 = jax.random.split(kk, 4)
        gamma = 1.0 + 0.1 * jax.random.normal(k1, (c,), jnp.float32)
        beta = 0.1 * jax.random.normal(k2, (c,), jnp.float32)
        mean = 0.05 * jax.random.normal(k3, (c,), jnp.float32)
        var = jnp.abs(jax.random.normal(k4, (c,), jnp.float32)) + 0.5
        return (gamma, beta, mean, var)

    return {
        "sq_w": 0.2 * jax.random.normal(ks[0], (squeeze_planes, inplanes, 1, 1), jnp.float32),
        "sq_b": 0.1 * jax.random.normal(ks[1], (squeeze_planes,), jnp.float32),
        "sq_bn": bn_params(ks[2], squeeze_planes),
        "e1_w": 0.2 * jax.random.normal(ks[3], (e1_planes, squeeze_planes, 1, 1), jnp.float32),
        "e1_b": 0.1 * jax.random.normal(ks[4], (e1_planes,), jnp.float32),
        "e1_bn": bn_params(ks[5], e1_planes),
        "e3_w": 0.2 * jax.random.normal(ks[6], (e3_planes, squeeze_planes, 3, 3), jnp.float32),
        "e3_b": 0.1 * jax.random.normal(ks[7], (e3_planes,), jnp.float32),
        "e3_bn": bn_params(ks[8], e3_planes),
    }


if __name__ == "__main__":
    key = jax.random.PRNGKey(0)

    def check(N, Cin, H, W, sq, e1, e3, k):
        kx, kp = jax.random.split(k)
        x = jax.random.normal(kx, (N, Cin, H, W), jnp.float32)
        params = make_params(kp, Cin, sq, e1, e3)
        out = jax.block_until_ready(fire_pallas(x, params))
        ref = jax.block_until_ready(fire_reference(x, params))
        assert out.shape == (N, e1 + e3, H, W), out.shape
        out32 = out.astype(jnp.float32)
        max_err = float(jnp.max(jnp.abs(out32 - ref)))
        # bf16 data movement + bf16 output with f32 MXU accumulation ->
        # bf16-level tolerance vs the pure-f32 reference.
        assert jnp.allclose(out32, ref, atol=5e-2, rtol=5e-2), max_err

    k1, k2 = jax.random.split(key)
    # Small Fire block: inplanes=4, squeeze=8, expand1x1=8, expand3x3=8.
    check(2, 4, 16, 16, 8, 8, 8, k1)
    # Odd spatial size (13x13, like late SqueezeNet fires): exercises the
    # spatial-padding path + in-kernel border mask + Eout lane padding.
    check(1, 4, 13, 13, 8, 8, 8, k2)
    print("KERNEL_OK")
</pallas_src>

<mosaic_0001>
module attributes {stable_mosaic.version = 11 : i64} {
  func.func @fire_kernel(%arg0: i32, %arg1: memref<1x16x16x4xbf16, #tpu.memory_space<vmem>>, %arg2: memref<4x128xbf16, #tpu.memory_space<vmem>>, %arg3: memref<1x128xf32, #tpu.memory_space<vmem>>, %arg4: memref<1152x128xbf16, #tpu.memory_space<vmem>>, %arg5: memref<1x128xf32, #tpu.memory_space<vmem>>, %arg6: memref<1x16x16x128xbf16, #tpu.memory_space<vmem>>) attributes {dimension_semantics = [#tpu.dimension_semantics<parallel>], iteration_bounds = array<i64: 2>, scalar_prefetch = 0 : i64, scratch_operands = 0 : i64, tpu.core_type = #tpu.core_type<tc>, window_params = [{transform_indices = @transform_0, window_bounds = array<i64: 1, 16, 16, 4>}, {pipeline_mode = #tpu.pipeline_mode<synchronous>, transform_indices = @transform_1, window_bounds = array<i64: 4, 128>}, {pipeline_mode = #tpu.pipeline_mode<synchronous>, transform_indices = @transform_2, window_bounds = array<i64: 1, 128>}, {pipeline_mode = #tpu.pipeline_mode<synchronous>, transform_indices = @transform_3, window_bounds = array<i64: 1152, 128>}, {pipeline_mode = #tpu.pipeline_mode<synchronous>, transform_indices = @transform_4, window_bounds = array<i64: 1, 128>}, {transform_indices = @transform_5, window_bounds = array<i64: 1, 16, 16, 128>}]} {
    %c0 = arith.constant 0 : index
    %c0_0 = arith.constant 0 : index
    %c0_1 = arith.constant 0 : index
    %c0_2 = arith.constant 0 : index
    %0 = vector.load %arg1[%c0, %c0_0, %c0_1, %c0_2] : memref<1x16x16x4xbf16, #tpu.memory_space<vmem>>, vector<1x16x16x4xbf16>
    %1 = vector.shape_cast %0 : vector<1x16x16x4xbf16> to vector<256x4xbf16>
    %c0_3 = arith.constant 0 : index
    %c0_4 = arith.constant 0 : index
    %2 = vector.load %arg2[%c0_3, %c0_4] : memref<4x128xbf16, #tpu.memory_space<vmem>>, vector<4x128xbf16>
    %cst = arith.constant dense<0.000000e+00> : vector<256x128xf32>
    %3 = tpu.matmul %1, %2, %cst {dimension_numbers = #tpu.dot_dimension_numbers<[1], [0], [0], [1], [0, 0, 1, 1], [], []>} : vector<256x4xbf16>, vector<4x128xbf16>, vector<256x128xf32> -> vector<256x128xf32>
    %c0_5 = arith.constant 0 : index
    %c0_6 = arith.constant 0 : index
    %4 = vector.load %arg3[%c0_5, %c0_6] : memref<1x128xf32, #tpu.memory_space<vmem>>, vector<1x128xf32>
    %5 = vector.broadcast %4 : vector<1x128xf32> to vector<256x128xf32>
    %6 = arith.addf %3, %5 : vector<256x128xf32>
    %cst_7 = arith.constant 0.000000e+00 : f32
    %7 = vector.broadcast %cst_7 : f32 to vector<256x128xf32>
    %8 = arith.maximumf %6, %7 : vector<256x128xf32>
    %9 = arith.truncf %8 : vector<256x128xf32> to vector<256x128xbf16>
    %10 = vector.shape_cast %9 : vector<256x128xbf16> to vector<1x16x16x128xbf16>
    %cst_8 = arith.constant 0.000000e+00 : bf16
    %11 = vector.broadcast %cst_8 : bf16 to vector<1x1x16x128xbf16>
    %cst_9 = arith.constant 0.000000e+00 : bf16
    %12 = vector.broadcast %cst_9 : bf16 to vector<1x18x1x128xbf16>
    %13 = tpu.concatenate %11, %10, %11 in 1 : vector<1x1x16x128xbf16>, vector<1x16x16x128xbf16>, vector<1x1x16x128xbf16> -> vector<1x18x16x128xbf16>
    %14 = tpu.concatenate %12, %13, %12 in 2 : vector<1x18x1x128xbf16>, vector<1x18x16x128xbf16>, vector<1x18x1x128xbf16> -> vector<1x18x18x128xbf16>
    %15 = vector.extract_strided_slice %14 {offsets = [0, 0, 0, 0], sizes = [1, 16, 16, 128], strides = [1, 1, 1, 1]} : vector<1x18x18x128xbf16> to vector<1x16x16x128xbf16>
    %16 = vector.extract_strided_slice %14 {offsets = [0, 0, 1, 0], sizes = [1, 16, 16, 128], strides = [1, 1, 1, 1]} : vector<1x18x18x128xbf16> to vector<1x16x16x128xbf16>
    %17 = vector.extract_strided_slice %14 {offsets = [0, 0, 2, 0], sizes = [1, 16, 16, 128], strides = [1, 1, 1, 1]} : vector<1x18x18x128xbf16> to vector<1x16x16x128xbf16>
    %18 = vector.extract_strided_slice %14 {offsets = [0, 1, 0, 0], sizes = [1, 16, 16, 128], strides = [1, 1, 1, 1]} : vector<1x18x18x128xbf16> to vector<1x16x16x128xbf16>
    %19 = vector.extract_strided_slice %14 {offsets = [0, 1, 1, 0], sizes = [1, 16, 16, 128], strides = [1, 1, 1, 1]} : vector<1x18x18x128xbf16> to vector<1x16x16x128xbf16>
    %20 = vector.extract_strided_slice %14 {offsets = [0, 1, 2, 0], sizes = [1, 16, 16, 128], strides = [1, 1, 1, 1]} : vector<1x18x18x128xbf16> to vector<1x16x16x128xbf16>
    %21 = vector.extract_strided_slice %14 {offsets = [0, 2, 0, 0], sizes = [1, 16, 16, 128], strides = [1, 1, 1, 1]} : vector<1x18x18x128xbf16> to vector<1x16x16x128xbf16>
    %22 = vector.extract_strided_slice %14 {offsets = [0, 2, 1, 0], sizes = [1, 16, 16, 128], strides = [1, 1, 1, 1]} : vector<1x18x18x128xbf16> to vector<1x16x16x128xbf16>
    %23 = vector.extract_strided_slice %14 {offsets = [0, 2, 2, 0], sizes = [1, 16, 16, 128], strides = [1, 1, 1, 1]} : vector<1x18x18x128xbf16> to vector<1x16x16x128xbf16>
    %24 = tpu.concatenate %15, %16, %17, %18, %19, %20, %21, %22, %23 in 3 : vector<1x16x16x128xbf16>, vector<1x16x16x128xbf16>, vector<1x16x16x128xbf16>, vector<1x16x16x128xbf16>, vector<1x16x16x128xbf16>, vector<1x16x16x128xbf16>, vector<1x16x16x128xbf16>, vector<1x16x16x128xbf16>, vector<1x16x16x128xbf16> -> vector<1x16x16x1152xbf16>
    %25 = vector.shape_cast %24 : vector<1x16x16x1152xbf16> to vector<256x1152xbf16>
    %c0_10 = arith.constant 0 : index
    %c0_11 = arith.constant 0 : index
    %26 = vector.load %arg4[%c0_10, %c0_11] : memref<1152x128xbf16, #tpu.memory_space<vmem>>, vector<1152x128xbf16>
    %cst_12 = arith.constant dense<0.000000e+00> : vector<256x128xf32>
    %27 = tpu.matmul %25, %26, %cst_12 {dimension_numbers = #tpu.dot_dimension_numbers<[1], [0], [0], [1], [0, 0, 1, 1], [], []>} : vector<256x1152xbf16>, vector<1152x128xbf16>, vector<256x128xf32> -> vector<256x128xf32>
    %c0_13 = arith.constant 0 : index
    %c0_14 = arith.constant 0 : index
    %28 = vector.load %arg5[%c0_13, %c0_14] : memref<1x128xf32, #tpu.memory_space<vmem>>, vector<1x128xf32>
    %29 = vector.broadcast %28 : vector<1x128xf32> to vector<256x128xf32>
    %30 = arith.addf %27, %29 : vector<256x128xf32>
    %cst_15 = arith.constant 0.000000e+00 : f32
    %31 = vector.broadcast %cst_15 : f32 to vector<256x128xf32>
    %32 = arith.maximumf %30, %31 : vector<256x128xf32>
    %33 = vector.shape_cast %32 : vector<256x128xf32> to vector<1x16x16x128xf32>
    %34 = arith.truncf %33 : vector<1x16x16x128xf32> to vector<1x16x16x128xbf16>
    %c0_16 = arith.constant 0 : index
    %c0_17 = arith.constant 0 : index
    %c0_18 = arith.constant 0 : index
    %c0_19 = arith.constant 0 : index
    %35 = vector.load %arg6[%c0_16, %c0_17, %c0_18, %c0_19] : memref<1x16x16x128xbf16, #tpu.memory_space<vmem>>, vector<1x16x16x128xbf16>
    tpu.vector_store %arg6[%c0_16, %c0_17, %c0_18, %c0_19], %34 {strides = array<i32>} : memref<1x16x16x128xbf16, #tpu.memory_space<vmem>>, vector<1x16x16x128xbf16>,
    return
  }
  func.func @transform_0(%arg0: i32) -> (i32, i32, i32, i32) {
    %c0_i32 = arith.constant 0 : i32
    %c0_i32_0 = arith.constant 0 : i32
    %c0_i32_1 = arith.constant 0 : i32
    %c0_i32_2 = arith.constant 0 : i32
    return %arg0, %c0_i32, %c0_i32_0, %c0_i32_1 : i32, i32, i32, i32
  }
  func.func @transform_1(%arg0: i32) -> (i32, i32) {
    %c0_i32 = arith.constant 0 : i32
    %c0_i32_0 = arith.constant 0 : i32
    %c0_i32_1 = arith.constant 0 : i32
    return %c0_i32, %c0_i32_0 : i32, i32
  }
  func.func @transform_2(%arg0: i32) -> (i32, i32) {
    %c0_i32 = arith.constant 0 : i32
    %c0_i32_0 = arith.constant 0 : i32
    %c0_i32_1 = arith.constant 0 : i32
    return %c0_i32, %c0_i32_0 : i32, i32
  }
  func.func @transform_3(%arg0: i32) -> (i32, i32) {
    %c0_i32 = arith.constant 0 : i32
    %c0_i32_0 = arith.constant 0 : i32
    %c0_i32_1 = arith.constant 0 : i32
    return %c0_i32, %c0_i32_0 : i32, i32
  }
  func.func @transform_4(%arg0: i32) -> (i32, i32) {
    %c0_i32 = arith.constant 0 : i32
    %c0_i32_0 = arith.constant 0 : i32
    %c0_i32_1 = arith.constant 0 : i32
    return %c0_i32, %c0_i32_0 : i32, i32
  }
  func.func @transform_5(%arg0: i32) -> (i32, i32, i32, i32) {
    %c0_i32 = arith.constant 0 : i32
    %c0_i32_0 = arith.constant 0 : i32
    %c0_i32_1 = arith.constant 0 : i32
    %c0_i32_2 = arith.constant 0 : i32
    return %arg0, %c0_i32, %c0_i32_0, %c0_i32_1 : i32, i32, i32, i32
  }
}

</mosaic_0001>

<bundles_post_ra>
// kernel: tpu_custom_call.1
= control target key start
LH: loop header
LB: loop body
LE: loop exit
PB: predicated region body
PF: predicated region fallthrough
CT: control target
= control target key end

     0   :  { %10 = vsyncpa [#allocation3], 0  ;;  %s4893_s0 = inlined_call_operand.vmem [shape: bf16[2,16,16,4], index: 0, kind: input, shape index: {}]   ;;  %s4894_s1 = inlined_call_operand.vmem [shape: bf16[4,128], index: 1, kind: input, shape index: {}]   ;;  %s4895_s2 = inlined_call_operand.vmem [shape: f32[1,128], index: 2, kind: input, shape index: {}]   ;;  %s4896_s3 = inlined_call_operand.hbm [shape: bf16[1152,128], index: 3, kind: input, shape index: {}]   ;;  %s4897_s4 = inlined_call_operand.vmem [shape: f32[1,128], index: 4, kind: input, shape index: {}]   ;;  %s4898_s5 = inlined_call_operand.hbm [shape: bf16[2,16,16,128], index: 5, kind: output, shape index: {}]  }
   0x1   :  { %11 = vsyncpa [#allocation4], 0 }
   0x2   :  { %13 = vsyncpa [#allocation4 + $0x1], 0  ;;  %s3949_s18 = smov 0   ;;  %s3951_s19 = smov 0  }
   0x3   :  { %s3953_s20 = smov 0   ;;  %s3955_s21 = smov 0  }
   0x4 LB: > { %s3970_s22 = sadd.s32 4294967295, %s3910_s21   ;;  %s2804_s23 = sadd.s32 4294967294, %s3910_s21   ;;  %s3910_s21 = sphi %s3955_s21, %s4922_s21   ;;  %s3906_s20 = sphi %s3953_s20, %s4921_s20   ;;  %s3902_s19 = sphi %s3951_s19, %s4920_s19   ;;  %s3898_s18 = sphi %s3949_s18, %s4919_s18  }
   0x5   : > { %s3974_s24 = sadd.s32 1, %s3910_s21   ;;  %s136_s25 = sadd.s32 1, %s3906_s20 }
   0x6   : > { %s133_s26 = ssub.s32 %s3910_s21, %s3974_s24  ;;  %p146_p0 = scmp.ne.s32.totalorder %s3906_s20, %s3902_s19 }
   0x7   : > { %p134_p1 = scmp.eq.s32.totalorder %s133_s26, 0  ;;  %p147_p2 = scmp.eq.s32.totalorder %s3970_s22, 1 }
   0x8   : > { %p152_p3 = scmp.ne.s32.totalorder %s3902_s19, %s3898_s18  ;;  %p153_p4 = scmp.eq.s32.totalorder %s2804_s23, 1 }
   0x9   : > { %s3985_s27 = scalar_select %p134_p1, %s3906_s20, %s136_s25  }
   0xa   : > { %p3987_p5 = por %p147_p2, %p146_p0  ;;  %p3991_p6 = por %p153_p4, %p152_p3 }
   0xb   : > { %p2805_p7 = scmp.ge.s32.totalorder %s3910_s21, 1  ;;  %p160_p8 = scmp.lt.s32.totalorder %s3910_s21, 3 }
   0xc   : > { %s4904_s28 = scalar_select %p3987_p5, 1, 0 }
   0xd   : > { %s4905_s29 = scalar_select %p3991_p6, 1, 0 }
   0xe   : > { %p4899_p9 = scmp.eq.s32.totalorder %s3970_s22, 0  ;;  %p3998_p10 = pnand %p2805_p7, %p160_p8 }
   0xf   : > { %s3912_s6 = smov [#allocation2]   ;;  %s3816_s11 = scalar_lea.hbm %s4896_s3, 9216 }
  0x10   : > { %s4906_s30 = scalar_select %p3998_p10, 1, 0 }
  0x11   : > { %s178_s7 = sshll.u32 %s3912_s6, 4  ;;  %p3679_p11 = pneg %p3998_p10  ;;  %s179_s7 = int_to_ptr.vmem [resolvable:$true] %s178_s7 }
  0x12   : > { %p3817_p13 = scmp.ne.s32.totalorder %s4896_s3, %s3816_s11  ;;  %p3823_p3 = scmp.lt.u32.totalorder %s3816_s11, %s4896_s3 }
  0x13   : > { %p4006_p12 = pnand %p4899_p9, %p3679_p11 }
  0x15   : > { %p3818_p0 = pneg %p4006_p12 }
  0x17   : > { %p3819_p1 = pnand %p3818_p0, %p3817_p13 }
  0x19   : > { %p3820_p2 = pneg %p3819_p1 }
  0x1b   : > { %p3825_p4 = pnand %p3823_p3, %p3820_p2 }
  0x1d   : > { %3828 = shalt.err (!%p3825_p4)
}
  0x1e   : > { %s3829_s16 = scalar_lea.vmem %s179_s7, 9216  ;;  %p3837_p9 = scmp.lt.s32.totalorder %s179_s7, %s179_s7 }
  0x1f   : > { %p3830_p7 = scmp.ne.s32.totalorder %s179_s7, %s3829_s16  ;;  %p3838_p6 = scmp.lt.s32.totalorder %s3829_s16, %s3829_s16 }
  0x21   : > { %p3832_p8 = pnand %p3830_p7, %p3818_p0  ;;  %p3839_p5 = por %p3838_p6, %p3837_p9 }
  0x23   : > { %p3833_p11 = pneg %p3832_p8 }
  0x25   : > { %p3840_p10 = pnand %p3839_p5, %p3833_p11 }
  0x27   : > { %3843 = shalt.err (!%p3840_p10)
}
  0x28   : > { %s3913_s17 = smov 64   ;;  %s3914_s23 = smov 4  }
  0x29   : > { %3682 = dma.hbm_to_vmem [thread:$0]  (!%p4006_p12), %s4896_s3, 9216, %s179_s7, [#allocation3], %s3913_s17, %s3913_s17, %s3914_s23  }
  0x2a   : > { %p4908_p13 = scmp.ne.s32.totalorder %s4906_s30, 0 }
  0x2c   : > { %205 = sbr.rel (%p4908_p13) target bundleno = 830 (0x33e), region = 40 }
  0x33   : > { %p4909_p1 = scmp.eq.s32.totalorder %s3970_s22, 0 }
  0x35   : > { %3889 = dma.done.wait (%p4909_p1), [#allocation3], 9216   ;;  %p4910_p0 = pmov %p4909_p1 }
  0x36   : > { %p233_p5 = scmp.lt.s32.totalorder %s3970_s22, 1  ;;  %vm408_vm0 = vcmask 1041408   ;;  %vm359_vm1 = vcmask 31744   ;;  %v271_v0 = vld [vmem:[%s4894_s1] sm:$0x3]  ;;  %v3746_v11 = vld [vmem:[#allocation2 + $0x48] sm:$0xff]  }
  0x37   : > { %3891 = vsyncadd (%p4910_p0), [#allocation3], 4294958080  ;;  %3672 = vmatprep.subr.msk.bf16.mxu0 %vm408_vm0, %v271_v0  ;;  %v410_v1 = vsel %vm408_vm0, %v271_v0, 0  ;;  %v3744_v9 = vld [vmem:[#allocation2 + $0x40] sm:$0xff]   ;;  %v3748_v13 = vld [vmem:[#allocation2 + $0x8] sm:$0xff]   ;;  %vm774_vm2 = vcmask 1040384  }
  0x38   : > { %s234_s6 = scalar_select %p233_p5, %s3970_s22, 1  ;;  %3575 = vmatpush3.bf16.msra.mxu0 %v410_v1  ;;  %v3745_v10 = vld [vmem:[#allocation2] sm:$0xff]   ;;  %3102 = vmatprep.subr.bf16.mxu1 %v3744_v9  ;;  %v3750_v16 = vld [vmem:[#allocation2 + $0x50] sm:$0xff]   ;;  %v3751_v18 = vld [vmem:[#allocation2 + $0xc8] sm:$0xff]   ;;  %vm775_vm3 = vsmask.f32 256 }
  0x39   : > { %3103 = vmatpush3.bf16.msra.mxu1 %v3745_v10  ;;  %v3747_v12 = vld [vmem:[#allocation2 + $0xc0] sm:$0xff]   ;;  %v3752_v19 = vld [vmem:[#allocation2 + $0x10] sm:$0xff]   ;;  %v3753_v20 = vld [vmem:[#allocation2 + $0x88] sm:$0xff]   ;;  %v3915_v40 = vmov 0   ;;  %vm811_vm5 = vsmask.f32 7424 }
  0x3a   : > { %s2956_s9 = sshll.u32 %s234_s6, 7  ;;  %3104 = vmatprep.subr.bf16.mxu1 %v3746_v11  ;;  %3214 = vmatprep.subr.bf16.mxu0 %v3747_v12  ;;  %v3749_v14 = vld [vmem:[#allocation2 + $0x80] sm:$0xff]   ;;  %v3754_v21 = vld [vmem:[#allocation2 + $0x58] sm:$0xff]   ;;  %v3755_v22 = vld [vmem:[#allocation2 + $0xd0] sm:$0xff]   ;;  %v624_v41 = vrot.slane %v3915_v40, 7  ;;  %vm1052_vm6 = vcmask 1046528  }
  0x3b   : > { %s4037_s11 = scalar_lea.vmem %s4893_s0, %s2956_s9  ;;  %v3756_v23 = vld [vmem:[#allocation2 + $0x18] sm:$0xff]   ;;  %v3757_v24 = vld [vmem:[#allocation2 + $0x90] sm:$0xff]   ;;  %v3758_v26 = vld [vmem:[#allocation2 + $0x60] sm:$0xff]   ;;  %s230_s16 = sand.u32 1, %s3902_s19  }
  0x3c   : > { %v3728_v2 = vld [vmem:[%s4037_s11] sm:$0xff]   ;;  %v3729_v3 = vld [vmem:[%s4037_s11 + $0x8] sm:$0xff]   ;;  %v3730_v4 = vld [vmem:[%s4037_s11 + $0x10] sm:$0xff]   ;;  %s2810_s17 = sshll.u32 %s230_s16, 7  ;;  %s2989_s25 = sshll.u32 %s3970_s22, 11 }
  0x3d   : > { %3576 = vmatprep.mubr.msk.bf16.mxu0 %vm359_vm1, %v3728_v2  ;;  %v3731_v5 = vld [vmem:[%s4037_s11 + $0x18] sm:$0xff]   ;;  %v3732_v6 = vld [vmem:[%s4037_s11 + $0x20] sm:$0xff]   ;;  %v3733_v7 = vld [vmem:[%s4037_s11 + $0x28] sm:$0xff]   ;;  %3105 = vmatpush3.bf16.msra.mxu1 %v3748_v13  ;;  %s4799_s23 = scalar_lea.vmem [#allocation5], %s2810_s17  ;;  %s4844_s8 = scalar_lea.hbm %s4898_s5, %s2989_s25 }
  0x3e   : > { %3577 = vmatmul.mubr.msk.bf16.vlgmr.msra.gmra.mrb[0].mxu0 %vm359_vm1, %v3729_v3  ;;  %v3734_v8 = vld [vmem:[%s4037_s11 + $0x30] sm:$0xff]   ;;  %v3735_v15 = vld [vmem:[%s4037_s11 + $0x38] sm:$0xff]   ;;  %v3736_v17 = vld [vmem:[%s4037_s11 + $0x40] sm:$0xff]   ;;  %3106 = vmatprep.subr.bf16.mxu1 %v3750_v16  ;;  %s2730_s26 = sshll.u32 %s4799_s23, 4  ;;  %s4852_s22 = scalar_lea.sflag [#allocation4], %s230_s16  ;;  %s4846_s26 = int_to_ptr.vmem [resolvable:$true] %s2730_s26 }
  0x3f   : > { %3580 = vmatprep.mubr.msk.bf16.mxu0 %vm359_vm1, %v3730_v4  ;;  %3215 = vmatpush3.bf16.msra.mxu0 %v3749_v14  ;;  %v3737_v25 = vld [vmem:[%s4037_s11 + $0x48] sm:$0xff]   ;;  %v3738_v27 = vld [vmem:[%s4037_s11 + $0x50] sm:$0xff]   ;;  %v3759_v28 = vld [vmem:[#allocation2 + $0xd8] sm:$0xff]   ;;  %s3844_s10 = scalar_lea.vmem %s4846_s26, 2048  ;;  %p4917_p9 = scmp.ne.s32.totalorder %s4904_s28, 0 }
  0x40   : > { %3216 = vmatprep.subr.bf16.mxu0 %v3751_v18  ;;  %v3760_v29 = vld [vmem:[#allocation2 + $0x20] sm:$0xff]   ;;  %v3761_v30 = vld [vmem:[#allocation2 + $0x98] sm:$0xff]   ;;  %v3741_v33 = vld [vmem:[%s4037_s11 + $0x68] sm:$0xff]   ;;  %p3845_p6 = scmp.ne.s32.totalorder %s4846_s26, %s3844_s10 }
  0x41   : > { %3107 = vmatpush3.bf16.msra.mxu1 %v3752_v19  ;;  %v3739_v31 = vld [vmem:[%s4037_s11 + $0x58] sm:$0xff]   ;;  %v3740_v32 = vld [vmem:[%s4037_s11 + $0x60] sm:$0xff]   ;;  %v3742_v34 = vld [vmem:[%s4037_s11 + $0x70] sm:$0xff]  }
  0x42   : > { %3108 = vmatprep.subr.bf16.mxu1 %v3754_v21  ;;  %v3743_v35 = vld [vmem:[%s4037_s11 + $0x78] sm:$0xff]   ;;  %v3762_v36 = vld [vmem:[#allocation2 + $0x68] sm:$0xff]   ;;  %v3763_v37 = vld [vmem:[#allocation2 + $0xe0] sm:$0xff]   ;;  %p3846_p10 = pnand %p3845_p6, %p4917_p9  ;;  %s3916_s11 = smov [#allocation5]  }
  0x43   : > { %3217 = vmatpush3.bf16.msra.mxu0 %v3753_v20  ;;  %v3764_v38 = vld [vmem:[#allocation2 + $0x28] sm:$0xff]   ;;  %v3765_v39 = vld [vmem:[#allocation2 + $0xa0] sm:$0xff]   ;;  %vm4074_vm4 = vmand %vm774_vm2, %vm775_vm3  ;;  %s3848_s30 = sshll.u32 %s3916_s11, 4  ;;  %s3849_s30 = int_to_ptr.vmem [resolvable:$false] %s3848_s30 }
  0x44   : > { %3218 = vmatprep.subr.bf16.mxu0 %v3755_v22  ;;  %v3766_v43 = vld [vmem:[#allocation2 + $0x70] sm:$0xff]   ;;  %v3767_v44 = vld [vmem:[#allocation2 + $0xe8] sm:$0xff]   ;;  %v4080_v47 = vsel %vm4074_vm4, 0, %v624_v41  ;;  %v4085_v49 = vsel %vm4074_vm4, %v624_v41, 0  ;;  %v3770_v50 = vld [vmem:[#allocation2 + $0x78] sm:$0xff]   ;;  %p3847_p12 = pneg %p3846_p10  ;;  %s3850_s7 = scalar_lea.vmem %s3849_s30, 4096 }
  0x45   : > { %3109 = vmatpush3.bf16.msra.mxu1 %v3756_v23  ;;  %v3768_v45 = vld [vmem:[#allocation2 + $0x30] sm:$0xff]   ;;  %v3769_v46 = vld [vmem:[#allocation2 + $0xa8] sm:$0xff]   ;;  %4913 = vst [vmem:[#allocation8_spill] sm:$0xff] %v4080_v47  ;;  %v815_v48 = vshll.u32 %v4080_v47, 16  ;;  %v813_v52 = vshrl.u32 %v4080_v47, 16  ;;  %v820_v54 = vshll.u32 %v4085_v49, 16  ;;  %p3851_p2 = scmp.lt.s32.totalorder %s4846_s26, %s3849_s30  ;;  %p3852_p3 = scmp.lt.s32.totalorder %s3850_s7, %s3844_s10 }
  0x46   : > { %3581 = vmatmul.mubr.msk.bf16.gmra.mrb[4].mxu0 %vm359_vm1, %v3731_v5  ;;  %3110 = vmatprep.subr.bf16.mxu1 %v3758_v26  ;;  %v3771_v51 = vld [vmem:[#allocation2 + $0xf0] sm:$0xff]   ;;  %v3772_v55 = vld [vmem:[#allocation2 + $0x38] sm:$0xff]   ;;  %v3776_v62 = vld [vmem:[#allocation2 + $0x140] sm:$0xff]  }
  0x47   : > { %3584 = vmatprep.mubr.msk.bf16.mxu0 %vm359_vm1, %v3732_v6  ;;  %3219 = vmatpush3.bf16.msra.mxu0 %v3757_v24  ;;  %v817_v53 = vrot.slane %v815_v48, 1  ;;  %v3773_v56 = vld [vmem:[#allocation2 + $0xb0] sm:$0xff]   ;;  %v822_v58 = vrot.slane %v820_v54, 1  ;;  %v3774_v60 = vld [vmem:[#allocation2 + $0xf8] sm:$0xff]   ;;  %v3777_v63 = vld [vmem:[#allocation2 + $0x100] sm:$0xff]   ;;  %p3853_p4 = por %p3852_p3, %p3851_p2 }
  0x48   : > { %3220 = vmatprep.subr.bf16.mxu0 %v3759_v28  ;;  %v3775_v61 = vld [vmem:[#allocation2 + $0xb8] sm:$0xff]   ;;  %v3778_v0 = vld [vmem:[#allocation2 + $0x148] sm:$0xff]   ;;  %v3780_v2 = vld [vmem:[#allocation2 + $0x150] sm:$0xff]  }
  0x49   : > { %3111 = vmatpush3.bf16.msra.mxu1 %v3760_v29  ;;  %v818_v57 = vor.u32 %v817_v53, %v813_v52  ;;  %v3779_v1 = vld [vmem:[#allocation2 + $0x108] sm:$0xff]   ;;  %v3781_v3 = vld [vmem:[#allocation2 + $0x110] sm:$0xff]   ;;  %v3782_v4 = vld [vmem:[#allocation2 + $0x158] sm:$0xff]   ;;  %p3854_p7 = pnand %p3853_p4, %p3847_p12 }
  0x4a   : > { %3112 = vmatprep.subr.bf16.mxu1 %v3762_v36  ;;  %v3783_v5 = vld [vmem:[#allocation2 + $0x1c0] sm:$0xff]   ;;  %v3784_v6 = vld [vmem:[#allocation2 + $0x118] sm:$0xff]   ;;  %v3790_v9 = vld [vmem:[#allocation2 + $0x168] sm:$0xff]  }
  0x4b   : > { %3221 = vmatpush3.bf16.msra.mxu0 %v3761_v30  ;;  %v4090_v59 = vsel %vm811_vm5, %v818_v57, %v822_v58  ;;  %v3792_v10 = vld [vmem:[#allocation2 + $0x128] sm:$0xff]   ;;  %v3794_v11 = vld [vmem:[#allocation2 + $0x170] sm:$0xff]   ;;  %v3798_v13 = vld [vmem:[#allocation2 + $0x178] sm:$0xff]  }
  0x4c   : > { %3222 = vmatprep.subr.bf16.mxu0 %v3763_v37  ;;  %1751 = vmatprep.mubr.bf16.mxu1 %v4090_v59  ;;  %v3796_v12 = vld [vmem:[#allocation2 + $0x130] sm:$0xff]   ;;  %v4097_v14 = vld [vmem:[%s4895_s2] ss:$0 sm:$0xff]  ;;  %v3800_v18 = vld [vmem:[#allocation2 + $0x138] sm:$0xff]  }
  0x4d   : > { %3113 = vmatpush3.bf16.msra.mxu1 %v3764_v38  ;;  %v1053_v38 = vrot.slane %v4080_v47, 1 }
  0x4e   : > { %3585 = vmatmul.mubr.msk.bf16.gmra.mrb[8].mxu0 %vm359_vm1, %v3733_v7  ;;  %3114 = vmatprep.subr.bf16.mxu1 %v3766_v43  ;;  %v3786_v7 = vld [vmem:[#allocation2 + $0x160] sm:$0xff]  }
  0x4f   : > { %3588 = vmatprep.mubr.msk.bf16.mxu0 %vm359_vm1, %v3734_v8  ;;  %3223 = vmatpush3.bf16.msra.mxu0 %v3765_v39  ;;  %v3788_v8 = vld [vmem:[#allocation2 + $0x120] sm:$0xff]  }
  0x50   : > { %3224 = vmatprep.subr.bf16.mxu0 %v3767_v44 }
  0x51   : > { %3115 = vmatpush3.bf16.msra.mxu1 %v3768_v45  ;;  %v4108_v45 = vld [vmem:[#allocation2 + $0x200] sm:$0xff]  }
  0x52   : > { %3116 = vmatprep.subr.bf16.mxu1 %v3770_v50 }
  0x53   : > { %3225 = vmatpush3.bf16.msra.mxu0 %v3769_v46 }
  0x54   : > { %3226 = vmatprep.subr.bf16.mxu0 %v3771_v51 }
  0x55   : > { %3117 = vmatpush3.bf16.msra.mxu1 %v3772_v55 }
  0x56   : > { %3589 = vmatmul.mubr.msk.bf16.gmra.mrb[12].mxu0 %vm359_vm1, %v3735_v15  ;;  %3326 = vmatprep.subr.bf16.mxu1 %v3776_v62 }
  0x57   : > { %3592 = vmatprep.mubr.msk.bf16.mxu0 %vm359_vm1, %v3736_v17  ;;  %3227 = vmatpush3.bf16.msra.mxu0 %v3773_v56 }
  0x58   : > { %1752 = vmatmul.mubr.bf16.vlgmr.msra.gmra.mrb[0].mxu1 %v4080_v47  ;;  %3228 = vmatprep.subr.bf16.mxu0 %v3774_v60 }
  0x59   : > { %3327 = vmatpush3.bf16.msra.mxu1 %v3777_v63 }
  0x5a   : > { %3328 = vmatprep.subr.bf16.mxu1 %v3778_v0 }
  0x5b   : > { %3229 = vmatpush3.bf16.msra.mxu0 %v3775_v61  ;;  %v3785_v61 = vld [vmem:[#allocation2 + $0x180] sm:$0xff]  }
  0x5c   : > { %3438 = vmatprep.subr.bf16.mxu0 %v3783_v5 }
  0x5d   : > { %3329 = vmatpush3.bf16.msra.mxu1 %v3779_v1 }
  0x5e   : > { %3593 = vmatmul.mubr.msk.bf16.gmra.mrb[16].mxu0 %vm359_vm1, %v3737_v25  ;;  %3330 = vmatprep.subr.bf16.mxu1 %v3780_v2 }
  0x5f   : > { %3596 = vmatprep.mubr.msk.bf16.mxu0 %vm359_vm1, %v3738_v27 }
  0x61   : > { %3331 = vmatpush3.bf16.msra.mxu1 %v3781_v3  ;;  %v3787_v3 = vld [vmem:[#allocation2 + $0x1c8] sm:$0xff]  }
  0x62   : > { %3332 = vmatprep.subr.bf16.mxu1 %v3782_v4 }
  0x65   : > { %3333 = vmatpush3.bf16.msra.mxu1 %v3784_v6 }
  0x66   : > { %3597 = vmatmul.mubr.msk.bf16.gmra.mrb[20].mxu0 %vm359_vm1, %v3739_v31  ;;  %3334 = vmatprep.subr.bf16.mxu1 %v3786_v7 }
  0x67   : > { %3600 = vmatprep.mubr.msk.bf16.mxu0 %vm359_vm1, %v3740_v32 }
  0x69   : > { %3335 = vmatpush3.bf16.msra.mxu1 %v3788_v8 }
  0x6a   : > { %3336 = vmatprep.subr.bf16.mxu1 %v3790_v9 }
  0x6d   : > { %3337 = vmatpush3.bf16.msra.mxu1 %v3792_v10 }
  0x6e   : > { %3601 = vmatmul.mubr.msk.bf16.gmra.mrb[24].mxu0 %vm359_vm1, %v3741_v33  ;;  %3338 = vmatprep.subr.bf16.mxu1 %v3794_v11 }
  0x6f   : > { %3604 = vmatprep.mubr.msk.bf16.mxu0 %vm359_vm1, %v3742_v34  ;;  %v1054_v34 = vrot.slane %v4085_v49, 1 }
  0x71   : > { %3339 = vmatpush3.bf16.msra.mxu1 %v3796_v12  ;;  %v4119_v58 = vsel %vm1052_vm6, %v1053_v38, %v1054_v34  ;;  %v3793_v38 = vld [vmem:[#allocation2 + $0x190] sm:$0xff]  }
  0x72   : > { %3340 = vmatprep.subr.bf16.mxu1 %v3798_v13  ;;  %4914 = vst [vmem:[#allocation9_spill] sm:$0xff] %v4119_v58 }
  0x75   : > { %3341 = vmatpush3.bf16.msra.mxu1 %v3800_v18 }
  0x76   : > { %3605 = vmatmul.mubr.msk.bf16.gmra.mrb[28].mxu0 %vm359_vm1, %v3743_v35  ;;  %3656 = vmatprep.subr.bf16.mxu1 %v4108_v45 }
 0x111   : > { %v3578_v15 = vpop.f32.mrb[0].mxu0 }
 0x112   : > { %v455_v16 = vadd.f32 %v3578_v15, %v4097_v14  ;;  %v446_v17 = vpop.f32.mrb[1].mxu0 }
 0x113   : > { %v447_v19 = vadd.f32 %v4097_v14, %v446_v17  ;;  %v3579_v20 = vpop.f32.mrb[2].mxu0 }
 0x114   : > { %v458_v21 = vadd.f32 %v3579_v20, %v4097_v14  ;;  %v449_v22 = vpop.f32.mrb[3].mxu0  ;;  %v575_v24 = vmax.f32 %v455_v16, 0.0  ;;  %v3789_v20 = vld [vmem:[#allocation2 + $0x188] sm:$0xff]  }
 0x115   : > { %v450_v23 = vadd.f32 %v4097_v14, %v449_v22  ;;  %v573_v26 = vmax.f32 %v447_v19, 0.0 }
 0x116   : > { %v576_v25 = vmax.f32 %v458_v21, 0.0 }
 0x117   : > { %v574_v27 = vmax.f32 %v450_v23, 0.0 }
 0x118   : > { %v606_v28 = vpack.c.bf16 %v576_v25, %v575_v24  ;;  %v3791_v25 = vld [vmem:[#allocation2 + $0x1d0] sm:$0xff]  }
 0x119   : > { %v605_v29 = vpack.c.bf16 %v574_v27, %v573_v26  ;;  %v3582_v30 = vpop.f32.mrb[4].mxu0 }
 0x11a   : > { %v636_v31 = vshrl.u32 %v606_v28, 16  ;;  %v471_v32 = vadd.f32 %v3582_v30, %v4097_v14  ;;  %v462_v33 = vpop.f32.mrb[5].mxu0  ;;  %v639_v40 = vshll.u32 %v606_v28, 16 }
 0x11b   : > { %v629_v35 = vshrl.u32 %v605_v29, 16  ;;  %v463_v36 = vadd.f32 %v4097_v14, %v462_v33  ;;  %v3583_v37 = vpop.f32.mrb[6].mxu0  ;;  %v632_v48 = vshll.u32 %v605_v29, 16 }
 0x11c   : > { %v638_v39 = vrot.slane %v636_v31, 7  ;;  %v579_v41 = vmax.f32 %v471_v32, 0.0  ;;  %v474_v43 = vadd.f32 %v3583_v37, %v4097_v14  ;;  %v465_v44 = vpop.f32.mrb[7].mxu0 }
 0x11d   : > { %v631_v46 = vrot.slane %v629_v35, 7  ;;  %v577_v50 = vmax.f32 %v463_v36, 0.0  ;;  %v466_v49 = vadd.f32 %v4097_v14, %v465_v44  ;;  %v3795_v44 = vld [vmem:[#allocation2 + $0x1d8] sm:$0xff]  }
 0x11e   : > { %v641_v51 = vor.u32 %v639_v40, %v638_v39  ;;  %v4113_v52 = vsel %vm4074_vm4, %v638_v39, 0  ;;  %v580_v53 = vmax.f32 %v474_v43, 0.0 }
 0x11f   : > { %v634_v54 = vor.u32 %v632_v48, %v631_v46  ;;  %v795_v55 = vsel %vm4074_vm4, %v631_v46, 0  ;;  %v578_v56 = vmax.f32 %v466_v49, 0.0  ;;  %v844_v2 = vshll.u32 %v4113_v52, 16 }
 0x120   : > { %v608_v57 = vpack.c.bf16 %v580_v53, %v579_v41  ;;  %v4123_v60 = vsel %vm4074_vm4, 0, %v641_v51  ;;  %v832_v7 = vshll.u32 %v795_v55, 16  ;;  %v1057_v24 = vrot.slane %v795_v55, 1 }
 0x121   : > { %v607_v62 = vpack.c.bf16 %v578_v56, %v577_v50  ;;  %v778_v63 = vsel %vm4074_vm4, 0, %v634_v54  ;;  %v3586_v0 = vpop.f32.mrb[8].mxu0  ;;  %v839_v1 = vshll.u32 %v4123_v60, 16  ;;  %v837_v22 = vshrl.u32 %v4123_v60, 16 }
 0x122   : > { %v650_v4 = vshrl.u32 %v608_v57, 16  ;;  %v653_v5 = vshll.u32 %v608_v57, 16  ;;  %1912 = vmatprep.mubr.bf16.mxu0 %v778_v63  ;;  %v827_v6 = vshll.u32 %v778_v63, 16  ;;  %v478_v8 = vpop.f32.mrb[9].mxu0  ;;  %v825_v11 = vshrl.u32 %v778_v63, 16 }
 0x123   : > { %v643_v9 = vshrl.u32 %v607_v62, 16  ;;  %v646_v10 = vshll.u32 %v607_v62, 16  ;;  %1913 = vmatmul.mubr.bf16.vlgmr.msra.gmra.mrb[32].mxu0 %v4119_v58  ;;  %v487_v12 = vadd.f32 %v3586_v0, %v4097_v14  ;;  %v3587_v13 = vpop.f32.mrb[10].mxu0  ;;  %v479_v17 = vadd.f32 %v4097_v14, %v478_v8 }
 0x124   : > { %v4131_v15 = vrot.slane %v650_v4, 7  ;;  %1920 = vmatprep.mubr.bf16.mxu0 %v4123_v60  ;;  %v829_v16 = vrot.slane %v827_v6, 1  ;;  %v841_v18 = vrot.slane %v839_v1, 1  ;;  %v481_v19 = vpop.f32.mrb[11].mxu0  ;;  %3439 = vmatpush3.bf16.msra.mxu0 %v3785_v61  ;;  %v1056_v23 = vrot.slane %v778_v63, 1 }
 0x125   : > { %v645_v21 = vrot.slane %v643_v9, 7  ;;  %3440 = vmatprep.subr.bf16.mxu0 %v3787_v3  ;;  %v834_v27 = vrot.slane %v832_v7, 1  ;;  %v583_v28 = vmax.f32 %v487_v12, 0.0  ;;  %v846_v29 = vrot.slane %v844_v2, 1  ;;  %v3797_v2 = vld [vmem:[#allocation2 + $0x198] sm:$0xff]  }
 0x126   : > { %v830_v26 = vor.u32 %v829_v16, %v825_v11  ;;  %v655_v30 = vor.u32 %v653_v5, %v4131_v15  ;;  %v842_v33 = vor.u32 %v841_v18, %v837_v22  ;;  %v581_v35 = vmax.f32 %v479_v17, 0.0  ;;  %v3799_v5 = vld [vmem:[#allocation2 + $0x1e0] sm:$0xff]  }
 0x127   : > { %v648_v31 = vor.u32 %v646_v10, %v645_v21  ;;  %v4139_v32 = vsel %vm4074_vm4, %v645_v21, 0  ;;  %v490_v36 = vadd.f32 %v3587_v13, %v4097_v14  ;;  %v482_v37 = vadd.f32 %v4097_v14, %v481_v19  ;;  %v3801_v18 = vld [vmem:[#allocation2 + $0x1a0] sm:$0xff]  }
 0x128   : > { %v4142_v34 = vsel %vm811_vm5, %v830_v26, %v834_v27  ;;  %3441 = vmatpush3.bf16.msra.mxu0 %v3789_v20  ;;  %v4148_v39 = vsel %vm1052_vm6, %v1056_v23, %v1057_v24  ;;  %v856_v41 = vshll.u32 %v4139_v32, 16  ;;  %v4156_v46 = vsel %vm811_vm5, %v842_v33, %v846_v29  ;;  %v3802_v23 = vld [vmem:[#allocation2 + $0x1e8] sm:$0xff]  }
 0x129   : > { %1759 = vmatprep.mubr.bf16.mxu1 %v4142_v34  ;;  %v4152_v40 = vsel %vm4074_vm4, 0, %v648_v31  ;;  %v3590_v43 = vpop.f32.mrb[12].mxu0  ;;  %3442 = vmatprep.subr.bf16.mxu0 %v3791_v25  ;;  %v584_v48 = vmax.f32 %v490_v36, 0.0  ;;  %v582_v50 = vmax.f32 %v482_v37, 0.0  ;;  %v1059_v54 = vrot.slane %v4123_v60, 1  ;;  %v3803_v37 = vld [vmem:[#allocation2 + $0x1a8] sm:$0xff]  }
 0x12a   : > { %1760 = vmatmul.mubr.bf16.gmra.mrb[4].mxu1 %v778_v63  ;;  %v851_v49 = vshll.u32 %v4152_v40, 16  ;;  %v494_v51 = vpop.f32.mrb[13].mxu0  ;;  %v849_v53 = vshrl.u32 %v4152_v40, 16  ;;  %v4165_v55 = vsel %vm4074_vm4, 0, %v655_v30  ;;  %v503_v56 = vadd.f32 %v3590_v43, %v4097_v14 }
 0x12b   : > { %1767 = vmatprep.mubr.bf16.mxu1 %v4156_v46  ;;  %1921 = vmatmul.mubr.bf16.gmra.mrb[36].mxu0 %v4148_v39  ;;  %v3591_v57 = vpop.f32.mrb[14].mxu0  ;;  %v610_v61 = vpack.c.bf16 %v584_v48, %v583_v28  ;;  %v609_v62 = vpack.c.bf16 %v582_v50, %v581_v35  ;;  %v495_v0 = vadd.f32 %v4097_v14, %v494_v51  ;;  %v858_v3 = vrot.slane %v856_v41, 1  ;;  %v3804_v48 = vld [vmem:[#allocation2 + $0x1f0] sm:$0xff]  }
 0x12c   : > { %1928 = vmatprep.mubr.bf16.mxu0 %v4152_v40  ;;  %v853_v63 = vrot.slane %v851_v49, 1  ;;  %v497_v1 = vpop.f32.mrb[15].mxu0  ;;  %3443 = vmatpush3.bf16.msra.mxu0 %v3793_v38  ;;  %v1060_v4 = vrot.slane %v4113_v52, 1  ;;  %v863_v9 = vshll.u32 %v4165_v55, 16  ;;  %v4175_v10 = vsel %vm4074_vm4, %v4131_v15, 0 }
 0x12d   : > { %3444 = vmatprep.subr.bf16.mxu0 %v3795_v44  ;;  %v664_v6 = vshrl.u32 %v610_v61, 16  ;;  %v657_v7 = vshrl.u32 %v609_v62, 16  ;;  %v660_v8 = vshll.u32 %v609_v62, 16  ;;  %v667_v13 = vshll.u32 %v610_v61, 16 }
 0x12e   : > { %v854_v11 = vor.u32 %v853_v63, %v849_v53  ;;  %v4178_v12 = vsel %vm1052_vm6, %v1059_v54, %v1060_v4  ;;  %v587_v17 = vmax.f32 %v503_v56, 0.0  ;;  %v585_v52 = vmax.f32 %v495_v0, 0.0  ;;  %v3805_v63 = vld [vmem:[#allocation2 + $0x1b0] sm:$0xff]  }
 0x12f   : > { %v659_v16 = vrot.slane %v657_v7, 7  ;;  %v666_v19 = vrot.slane %v664_v6, 7  ;;  %v506_v21 = vadd.f32 %v3591_v57, %v4097_v14  ;;  %v498_v22 = vadd.f32 %v4097_v14, %v497_v1 }
 0x130   : > { %3445 = vmatpush3.bf16.msra.mxu0 %v3797_v2  ;;  %v4181_v20 = vsel %vm811_vm5, %v854_v11, %v858_v3  ;;  %v861_v25 = vshrl.u32 %v4165_v55, 16  ;;  %v865_v26 = vrot.slane %v863_v9, 1  ;;  %v868_v27 = vshll.u32 %v4175_v10, 16 }
 0x131   : > { %v3594_v15 = vpop.f32.mrb[16].mxu0  ;;  %3446 = vmatprep.subr.bf16.mxu0 %v3799_v5  ;;  %v662_v24 = vor.u32 %v660_v8, %v659_v16  ;;  %v588_v29 = vmax.f32 %v506_v21, 0.0  ;;  %v586_v30 = vmax.f32 %v498_v22, 0.0  ;;  %v4192_v33 = vsel %vm4074_vm4, %v659_v16, 0  ;;  %v3807_v21 = vld [vmem:[#allocation2 + $0x1b8] sm:$0xff]  }
 0x132   : > { %1768 = vmatmul.mubr.bf16.gmra.mrb[8].mxu1 %v4123_v60  ;;  %v510_v28 = vpop.f32.mrb[17].mxu0  ;;  %v669_v38 = vor.u32 %v667_v13, %v666_v19  ;;  %v866_v50 = vor.u32 %v865_v26, %v861_v25  ;;  %v870_v49 = vrot.slane %v868_v27, 1  ;;  %v1062_v51 = vrot.slane %v4152_v40, 1 }
 0x133   : > { %1775 = vmatprep.mubr.bf16.mxu1 %v4181_v20  ;;  %1929 = vmatmul.mubr.bf16.gmra.mrb[40].mxu0 %v4178_v12  ;;  %v3595_v31 = vpop.f32.mrb[18].mxu0  ;;  %v4197_v35 = vsel %vm4074_vm4, 0, %v662_v24  ;;  %v4199_v41 = vpack.c.bf16 %v588_v29, %v587_v17  ;;  %v611_v43 = vpack.c.bf16 %v586_v30, %v585_v52  ;;  %v1063_v53 = vrot.slane %v4139_v32, 1  ;;  %v3806_v32 = vld [vmem:[#allocation2 + $0x1f8] sm:$0xff]  }
 0x134   : > { %1936 = vmatprep.mubr.bf16.mxu0 %v4165_v55  ;;  %v513_v36 = vpop.f32.mrb[19].mxu0  ;;  %3447 = vmatpush3.bf16.msra.mxu0 %v3801_v18  ;;  %v875_v44 = vshll.u32 %v4197_v35, 16  ;;  %v880_v56 = vshll.u32 %v4192_v33, 16  ;;  %v873_v57 = vshrl.u32 %v4197_v35, 16  ;;  %v519_v62 = vadd.f32 %v3594_v15, %v4097_v14 }
 0x135   : > { %3448 = vmatprep.subr.bf16.mxu0 %v3802_v23  ;;  %v671_v54 = vshrl.u32 %v611_v43, 16  ;;  %v674_v1 = vshll.u32 %v611_v43, 16  ;;  %v4209_v2 = vsel %vm4074_vm4, 0, %v669_v38  ;;  %v511_v3 = vadd.f32 %v4097_v14, %v510_v28 }
 0x136   : > { %v877_v61 = vrot.slane %v875_v44, 1  ;;  %v4214_v5 = vsel %vm811_vm5, %v866_v50, %v870_v49  ;;  %v4217_v6 = vsel %vm1052_vm6, %v1062_v51, %v1063_v53  ;;  %v4221_v8 = vsel %vm4074_vm4, %v666_v19, 0 }
 0x137   : > { %v673_v0 = vrot.slane %v671_v54, 7  ;;  %v882_v9 = vrot.slane %v880_v56, 1  ;;  %v678_v13 = vshrl.u32 %v4199_v41, 16  ;;  %v591_v17 = vmax.f32 %v519_v62, 0.0 }
 0x138   : > { %3449 = vmatpush3.bf16.msra.mxu0 %v3803_v37  ;;  %v878_v16 = vor.u32 %v877_v61, %v873_v57  ;;  %v887_v52 = vshll.u32 %v4209_v2, 16  ;;  %v589_v19 = vmax.f32 %v511_v3, 0.0  ;;  %v522_v15 = vadd.f32 %v3595_v31, %v4097_v14 }
 0x139   : > { %v3598_v4 = vpop.f32.mrb[20].mxu0  ;;  %3450 = vmatprep.subr.bf16.mxu0 %v3804_v48  ;;  %v676_v22 = vor.u32 %v674_v1, %v673_v0  ;;  %v514_v23 = vadd.f32 %v4097_v14, %v513_v36  ;;  %v1065_v24 = vrot.slane %v4165_v55, 1  ;;  %v1066_v25 = vrot.slane %v4175_v10, 1 }
 0x13a   : > { %1776 = vmatmul.mubr.bf16.gmra.mrb[12].mxu1 %v4152_v40  ;;  %v526_v7 = vpop.f32.mrb[21].mxu0  ;;  %v681_v26 = vshll.u32 %v4199_v41, 16  ;;  %v592_v27 = vmax.f32 %v522_v15, 0.0  ;;  %v680_v29 = vrot.slane %v678_v13, 7  ;;  %v4234_v30 = vsel %vm811_vm5, %v878_v16, %v882_v9 }
 0x13b   : > { %1783 = vmatprep.mubr.bf16.mxu1 %v4214_v5  ;;  %1937 = vmatmul.mubr.bf16.gmra.mrb[44].mxu0 %v4217_v6  ;;  %v3599_v11 = vpop.f32.mrb[22].mxu0  ;;  %v590_v28 = vmax.f32 %v514_v23, 0.0  ;;  %v885_v37 = vshrl.u32 %v4209_v2, 16  ;;  %v892_v38 = vshll.u32 %v4221_v8, 16  ;;  %v889_v31 = vrot.slane %v887_v52, 1 }
 0x13c   : > { %1944 = vmatprep.mubr.bf16.mxu0 %v4197_v35  ;;  %v529_v18 = vpop.f32.mrb[23].mxu0  ;;  %3451 = vmatpush3.bf16.msra.mxu0 %v3805_v63  ;;  %v4238_v36 = vpack.c.bf16 %v592_v27, %v591_v17  ;;  %v4242_v10 = vsel %vm4074_vm4, 0, %v676_v22  ;;  %v4247_v44 = vsel %vm1052_vm6, %v1065_v24, %v1066_v25  ;;  %v535_v48 = vadd.f32 %v3598_v4, %v4097_v14 }
 0x13d   : > { %3452 = vmatprep.subr.bf16.mxu0 %v3806_v32  ;;  %v613_v43 = vpack.c.bf16 %v590_v28, %v589_v19  ;;  %v527_v50 = vadd.f32 %v4097_v14, %v526_v7  ;;  %v4255_v53 = vsel %vm4074_vm4, %v673_v0, 0  ;;  %v1068_v54 = vrot.slane %v4197_v35, 1 }
 0x13e   : > { %v1069_v56 = vrot.slane %v4192_v33, 1  ;;  %v899_v57 = vshll.u32 %v4242_v10, 16  ;;  %v683_v62 = vor.u32 %v681_v26, %v680_v29  ;;  %v890_v63 = vor.u32 %v889_v31, %v885_v37 }
 0x13f   : > { %v894_v1 = vrot.slane %v892_v38, 1  ;;  %v685_v3 = vshrl.u32 %v613_v43, 16  ;;  %v595_v4 = vmax.f32 %v535_v48, 0.0  ;;  %v593_v32 = vmax.f32 %v527_v50, 0.0 }
 0x140   : > { %3453 = vmatpush3.bf16.msra.mxu0 %v3807_v21  ;;  %v538_v7 = vadd.f32 %v3599_v11, %v4097_v14  ;;  %v530_v0 = vadd.f32 %v4097_v14, %v529_v18  ;;  %v904_v9 = vshll.u32 %v4255_v53, 16  ;;  %v897_v13 = vshrl.u32 %v4242_v10, 16 }
 0x141   : > { %v3602_v41 = vpop.f32.mrb[24].mxu0  ;;  %3608 = vmatprep.subr.bf16.mxu0 %v4108_v45  ;;  %v901_v16 = vrot.slane %v899_v57, 1  ;;  %v4266_v52 = vsel %vm1052_vm6, %v1068_v54, %v1069_v56  ;;  %v687_v21 = vrot.slane %v685_v3, 7  ;;  %v688_v22 = vshll.u32 %v613_v43, 16 }
 0x142   : > { %1784 = vmatmul.mubr.bf16.gmra.mrb[16].mxu1 %v4165_v55  ;;  %v542_v49 = vpop.f32.mrb[25].mxu0  ;;  %v596_v17 = vmax.f32 %v538_v7, 0.0  ;;  %v594_v33 = vmax.f32 %v530_v0, 0.0  ;;  %v4270_v15 = vsel %vm811_vm5, %v890_v63, %v894_v1  ;;  %v4274_v11 = vsel %vm4074_vm4, 0, %v683_v62 }
 0x143   : > { %1791 = vmatprep.mubr.bf16.mxu1 %v4234_v30  ;;  %1945 = vmatmul.mubr.bf16.gmra.mrb[48].mxu0 %v4247_v44  ;;  %v3603_v51 = vpop.f32.mrb[26].mxu0  ;;  %v902_v26 = vor.u32 %v901_v16, %v897_v13  ;;  %v906_v27 = vrot.slane %v904_v9, 1  ;;  %v1071_v28 = vrot.slane %v4209_v2, 1  ;;  %v1072_v37 = vrot.slane %v4221_v8, 1 }
 0x144   : > { %1952 = vmatprep.mubr.bf16.mxu0 %v4209_v2  ;;  %v545_v61 = vpop.f32.mrb[27].mxu0  ;;  %v4276_v18 = vpack.c.bf16 %v596_v17, %v595_v4  ;;  %v4278_v23 = vpack.c.bf16 %v594_v33, %v593_v32  ;;  %v692_v31 = vshrl.u32 %v4238_v36, 16  ;;  %v690_v43 = vor.u32 %v688_v22, %v687_v21 }
 0x145   : > { %v911_v48 = vshll.u32 %v4274_v11, 16  ;;  %v4289_v50 = vsel %vm4074_vm4, %v680_v29, 0  ;;  %v551_v54 = vadd.f32 %v3602_v41, %v4097_v14  ;;  %v543_v56 = vadd.f32 %v4097_v14, %v542_v49 }
 0x146   : > { %v695_v57 = vshll.u32 %v4238_v36, 16  ;;  %v4295_v62 = vsel %vm811_vm5, %v902_v26, %v906_v27  ;;  %v4298_v8 = vsel %vm1052_vm6, %v1071_v28, %v1072_v37  ;;  %v909_v63 = vshrl.u32 %v4274_v11, 16 }
 0x147   : > { %v694_v1 = vrot.slane %v692_v31, 7  ;;  %v913_v3 = vrot.slane %v911_v48, 1  ;;  %v916_v4 = vshll.u32 %v4289_v50, 16  ;;  %v4304_v29 = vsel %vm4074_vm4, 0, %v690_v43 }
 0x148   : > { %v599_v41 = vmax.f32 %v551_v54, 0.0  ;;  %v597_v36 = vmax.f32 %v543_v56, 0.0  ;;  %v554_v49 = vadd.f32 %v3603_v51, %v4097_v14  ;;  %v546_v32 = vadd.f32 %v4097_v14, %v545_v61 }
 0x149   : > { %v3606_v19 = vpop.f32.mrb[28].mxu0  ;;  %v1074_v7 = vrot.slane %v4242_v10, 1  ;;  %v923_v0 = vshll.u32 %v4304_v29, 16  ;;  %v4316_v16 = vsel %vm4074_vm4, %v687_v21, 0  ;;  %v914_v17 = vor.u32 %v913_v3, %v909_v63 }
 0x14a   : > { %1792 = vmatmul.mubr.bf16.gmra.mrb[20].mxu1 %v4197_v35  ;;  %v558_v24 = vpop.f32.mrb[29].mxu0  ;;  %v600_v9 = vmax.f32 %v554_v49, 0.0  ;;  %v598_v13 = vmax.f32 %v546_v32, 0.0  ;;  %v1075_v51 = vrot.slane %v4255_v53, 1  ;;  %v699_v61 = vshrl.u32 %v4278_v23, 16 }
 0x14b   : > { %1799 = vmatprep.mubr.bf16.mxu1 %v4270_v15  ;;  %1953 = vmatmul.mubr.bf16.gmra.mrb[52].mxu0 %v4266_v52  ;;  %v3607_v25 = vpop.f32.mrb[30].mxu0  ;;  %v697_v33 = vor.u32 %v695_v57, %v694_v1  ;;  %v918_v22 = vrot.slane %v916_v4, 1  ;;  %v567_v28 = vadd.f32 %v3606_v19, %v4097_v14  ;;  %v559_v37 = vadd.f32 %v4097_v14, %v558_v24 }
 0x14c   : > { %1960 = vmatprep.mubr.bf16.mxu0 %v4242_v10  ;;  %v561_v38 = vpop.f32.mrb[31].mxu0  ;;  %v4320_v26 = vpack.c.bf16 %v600_v9, %v599_v41  ;;  %v4322_v27 = vpack.c.bf16 %v598_v13, %v597_v36  ;;  %v921_v31 = vshrl.u32 %v4304_v29, 16  ;;  %v925_v43 = vrot.slane %v923_v0, 1 }
 0x14d   : > { %v928_v21 = vshll.u32 %v4316_v16, 16  ;;  %v701_v48 = vrot.slane %v699_v61, 7  ;;  %v702_v53 = vshll.u32 %v4278_v23, 16  ;;  %v4331_v54 = vsel %vm811_vm5, %v914_v17, %v918_v22 }
 0x14e   : > { %v4334_v56 = vsel %vm1052_vm6, %v1074_v7, %v1075_v51  ;;  %v4338_v19 = vsel %vm4074_vm4, 0, %v697_v33  ;;  %v603_v24 = vmax.f32 %v567_v28, 0.0  ;;  %v601_v57 = vmax.f32 %v559_v37, 0.0 }
 0x14f   : > { %v570_v23 = vadd.f32 %v3607_v25, %v4097_v14  ;;  %v562_v63 = vadd.f32 %v4097_v14, %v561_v38  ;;  %v926_v3 = vor.u32 %v925_v43, %v921_v31  ;;  %v930_v4 = vrot.slane %v928_v21, 1 }
 0x150   : > { %v704_v41 = vor.u32 %v702_v53, %v701_v48  ;;  %v1077_v32 = vrot.slane %v4274_v11, 1  ;;  %v1078_v7 = vrot.slane %v4289_v50, 1  ;;  %v935_v0 = vshll.u32 %v4338_v19, 16 }
 0x151   : > { %v604_v36 = vmax.f32 %v570_v23, 0.0  ;;  %v602_v49 = vmax.f32 %v562_v63, 0.0  ;;  %v804_v9 = vsel %vm4074_vm4, %v694_v1, 0  ;;  %v706_v25 = vshrl.u32 %v4276_v18, 16 }
 0x152   : > { %1800 = vmatmul.mubr.bf16.gmra.mrb[24].mxu1 %v4209_v2  ;;  %v4356_v38 = vsel %vm811_vm5, %v926_v3, %v930_v4  ;;  %v4360_v17 = vsel %vm4074_vm4, 0, %v704_v41  ;;  %v4364_v50 = vsel %vm1052_vm6, %v1077_v32, %v1078_v7  ;;  %v933_v1 = vshrl.u32 %v4338_v19, 16 }
 0x153   : > { %1807 = vmatprep.mubr.bf16.mxu1 %v4295_v62  ;;  %1961 = vmatmul.mubr.bf16.gmra.mrb[56].mxu0 %v4298_v8  ;;  %v4351_v13 = vpack.c.bf16 %v604_v36, %v603_v24  ;;  %v4353_v14 = vpack.c.bf16 %v602_v49, %v601_v57  ;;  %v937_v51 = vrot.slane %v935_v0, 1  ;;  %v940_v61 = vshll.u32 %v804_v9, 16 }
 0x154   : > { %1968 = vmatprep.mubr.bf16.mxu0 %v4274_v11  ;;  %v708_v33 = vrot.slane %v706_v25, 7  ;;  %v709_v22 = vshll.u32 %v4276_v18, 16  ;;  %v947_v28 = vshll.u32 %v4360_v17, 16  ;;  %v805_v37 = vsel %vm4074_vm4, %v701_v48, 0 }
 0x155   : > { %v713_v31 = vshrl.u32 %v4322_v27, 16  ;;  %v938_v43 = vor.u32 %v937_v51, %v933_v1  ;;  %v942_v21 = vrot.slane %v940_v61, 1  ;;  %v1080_v53 = vrot.slane %v4304_v29, 1 }
 0x156   : > { %v1081_v24 = vrot.slane %v4316_v16, 1  ;;  %v711_v18 = vor.u32 %v709_v22, %v708_v33  ;;  %v945_v57 = vshrl.u32 %v4360_v17, 16  ;;  %v949_v23 = vrot.slane %v947_v28, 1 }
 0x157   : > { %v952_v63 = vshll.u32 %v805_v37, 16  ;;  %v715_v3 = vrot.slane %v713_v31, 7  ;;  %v716_v4 = vshll.u32 %v4322_v27, 16  ;;  %v4381_v48 = vsel %vm811_vm5, %v938_v43, %v942_v21  ;;  %v3118_v43 = vpop.f32.mrb[0].mxu1 }
 0x158   : > { %v4384_v41 = vsel %vm1052_vm6, %v1080_v53, %v1081_v24  ;;  %v4390_v16 = vsel %vm4074_vm4, 0, %v711_v18  ;;  %v950_v36 = vor.u32 %v949_v23, %v945_v57  ;;  %v1083_v32 = vrot.slane %v4338_v19, 1  ;;  %v3119_v53 = vpop.f32.mrb[1].mxu1 }
 0x159   : > { %v954_v27 = vrot.slane %v952_v63, 1  ;;  %v718_v49 = vor.u32 %v716_v4, %v715_v3  ;;  %v1084_v7 = vrot.slane %v804_v9, 1  ;;  %v959_v0 = vshll.u32 %v4390_v16, 16  ;;  %v3121_v57 = vpop.f32.mrb[2].mxu1 }
 0x15a   : > { %1808 = vmatmul.mubr.bf16.gmra.mrb[28].mxu1 %v4242_v10  ;;  %v806_v25 = vsel %vm4074_vm4, %v708_v33, 0  ;;  %v720_v1 = vshrl.u32 %v4320_v26, 16  ;;  %v957_v9 = vshrl.u32 %v4390_v16, 16  ;;  %v723_v21 = vshll.u32 %v4320_v26, 16  ;;  %v3122_v26 = vpop.f32.mrb[3].mxu1 }
 0x15b   : > { %1815 = vmatprep.mubr.bf16.mxu1 %v4331_v54  ;;  %1969 = vmatmul.mubr.bf16.gmra.mrb[60].mxu0 %v4334_v56  ;;  %v4399_v51 = vsel %vm811_vm5, %v950_v36, %v954_v27  ;;  %v4403_v61 = vsel %vm4074_vm4, 0, %v718_v49  ;;  %v4407_v22 = vsel %vm1052_vm6, %v1083_v32, %v1084_v7  ;;  %v961_v28 = vrot.slane %v959_v0, 1 }
 0x15c   : > { %1976 = vmatprep.mubr.bf16.mxu0 %v4304_v29  ;;  %v964_v31 = vshll.u32 %v806_v25, 16  ;;  %v722_v33 = vrot.slane %v720_v1, 7  ;;  %v971_v24 = vshll.u32 %v4403_v61, 16  ;;  %v4415_v18 = vadd.f32 %v3119_v53, %v3118_v43 }
 0x15d   : > { %v807_v23 = vsel %vm4074_vm4, %v715_v3, 0  ;;  %v1086_v63 = vrot.slane %v4360_v17, 1  ;;  %v727_v4 = vshrl.u32 %v4353_v14, 16  ;;  %v962_v36 = vor.u32 %v961_v28, %v957_v9 }
 0x15e   : > { %v966_v27 = vrot.slane %v964_v31, 1  ;;  %v1087_v49 = vrot.slane %v805_v37, 1  ;;  %v4421_v32 = vadd.f32 %v3122_v26, %v3121_v57  ;;  %v725_v7 = vor.u32 %v723_v21, %v722_v33 }
 0x15f   : > { %v969_v0 = vshrl.u32 %v4403_v61, 16  ;;  %v973_v1 = vrot.slane %v971_v24, 1  ;;  %v976_v43 = vshll.u32 %v807_v23, 16  ;;  %v729_v53 = vrot.slane %v727_v4, 7 }
 0x160   : > { %v730_v58 = vshll.u32 %v4353_v14, 16  ;;  %v4427_v3 = vsel %vm811_vm5, %v962_v36, %v966_v27  ;;  %v4430_v47 = vsel %vm1052_vm6, %v1086_v63, %v1087_v49  ;;  %v4436_v37 = vsel %vm4074_vm4, 0, %v725_v7 }
 0x161   : > { %v974_v9 = vor.u32 %v973_v1, %v969_v0  ;;  %v978_v14 = vrot.slane %v976_v43, 1  ;;  %v1089_v31 = vrot.slane %v4390_v16, 1  ;;  %v1090_v21 = vrot.slane %v806_v25, 1 }
 0x162   : > { %1816 = vmatmul.mubr.bf16.gmra.mrb[32].mxu1 %v4274_v11  ;;  %v732_v28 = vor.u32 %v730_v58, %v729_v53  ;;  %v983_v24 = vshll.u32 %v4436_v37, 16  ;;  %v808_v57 = vsel %vm4074_vm4, %v722_v33, 0  ;;  %v981_v58 = vshrl.u32 %v4436_v37, 16 }
 0x163   : > { %1823 = vmatprep.mubr.bf16.mxu1 %v4356_v38  ;;  %1977 = vmatmul.mubr.bf16.gmra.mrb[64].mxu0 %v4364_v50  ;;  %v4444_v63 = vsel %vm811_vm5, %v974_v9, %v978_v14  ;;  %v4452_v26 = vsel %vm1052_vm6, %v1089_v31, %v1090_v21  ;;  %v988_v36 = vshll.u32 %v808_v57, 16  ;;  %v809_v27 = vsel %vm4074_vm4, %v729_v53, 0 }
 0x164   : > { %1984 = vmatprep.mubr.bf16.mxu0 %v4338_v19  ;;  %v4448_v4 = vsel %vm4074_vm4, 0, %v732_v28  ;;  %v985_v25 = vrot.slane %v983_v24, 1  ;;  %v1092_v0 = vrot.slane %v4403_v61, 1  ;;  %v1093_v1 = vrot.slane %v807_v23, 1 }
 0x165   : > { %v995_v33 = vshll.u32 %v4448_v4, 16  ;;  %v990_v7 = vrot.slane %v988_v36, 1  ;;  %v734_v43 = vshrl.u32 %v4351_v13, 16  ;;  %v993_v9 = vshrl.u32 %v4448_v4, 16 }
 0x166   : > { %v986_v49 = vor.u32 %v985_v25, %v981_v58  ;;  %v1000_v28 = vshll.u32 %v809_v27, 16  ;;  %v4469_v21 = vsel %vm1052_vm6, %v1092_v0, %v1093_v1  ;;  %v737_v24 = vshll.u32 %v4351_v13, 16 }
 0x167   : > { %v997_v14 = vrot.slane %v995_v33, 1  ;;  %v4471_v53 = vrot.slane %v734_v43, 7  ;;  %v1095_v25 = vrot.slane %v4436_v37, 1  ;;  %v1096_v36 = vrot.slane %v808_v57, 1  ;;  %v3809_v43 = vld [vmem:[#allocation2 + $0x208] sm:$0xff]  }
 0x168   : > { %v4466_v31 = vsel %vm811_vm5, %v986_v49, %v990_v7  ;;  %v1002_v58 = vrot.slane %v1000_v28, 1  ;;  %v1098_v57 = vrot.slane %v4448_v4, 1  ;;  %v1099_v0 = vrot.slane %v809_v27, 1  ;;  %v3810_v27 = vld [vmem:[#allocation2 + $0x210] sm:$0xff]  }
 0x169   : > { %v998_v23 = vor.u32 %v997_v14, %v993_v9  ;;  %v739_v33 = vor.u32 %v737_v24, %v4471_v53  ;;  %v4484_v13 = vsel %vm1052_vm6, %v1095_v25, %v1096_v36 }
 0x16a   : > { %1824 = vmatmul.mubr.bf16.gmra.mrb[36].mxu1 %v4304_v29  ;;  %v4496_v1 = vsel %vm1052_vm6, %v1098_v57, %v1099_v0 }
 0x16b   : > { %1831 = vmatprep.mubr.bf16.mxu1 %v4381_v48  ;;  %1985 = vmatmul.mubr.bf16.gmra.mrb[68].mxu0 %v4384_v41  ;;  %v4480_v49 = vsel %vm811_vm5, %v998_v23, %v1002_v58  ;;  %v4490_v7 = vsel %vm4074_vm4, 0, %v739_v33 }
 0x16c   : > { %1992 = vmatprep.mubr.bf16.mxu0 %v4360_v17  ;;  %v1118_v58 = vshrl.u32 %v4490_v7, 16 }
 0x172   : > { %1832 = vmatmul.mubr.bf16.gmra.mrb[40].mxu1 %v4338_v19 }
 0x173   : > { %1839 = vmatprep.mubr.bf16.mxu1 %v4399_v51  ;;  %1993 = vmatmul.mubr.bf16.gmra.mrb[72].mxu0 %v4407_v22 }
 0x174   : > { %2000 = vmatprep.mubr.bf16.mxu0 %v4390_v16 }
 0x17a   : > { %1840 = vmatmul.mubr.bf16.gmra.mrb[44].mxu1 %v4360_v17 }
 0x17b   : > { %1847 = vmatprep.mubr.bf16.mxu1 %v4427_v3  ;;  %2001 = vmatmul.mubr.bf16.gmra.mrb[76].mxu0 %v4430_v47 }
 0x17c   : > { %2008 = vmatprep.mubr.bf16.mxu0 %v4403_v61 }
 0x182   : > { %1848 = vmatmul.mubr.bf16.gmra.mrb[48].mxu1 %v4390_v16 }
 0x183   : > { %1855 = vmatprep.mubr.bf16.mxu1 %v4444_v63  ;;  %2009 = vmatmul.mubr.bf16.gmra.mrb[80].mxu0 %v4452_v26 }
 0x184   : > { %2016 = vmatprep.mubr.bf16.mxu0 %v4436_v37 }
 0x18a   : > { %1856 = vmatmul.mubr.bf16.gmra.mrb[52].mxu1 %v4403_v61 }
 0x18b   : > { %1863 = vmatprep.mubr.bf16.mxu1 %v4466_v31  ;;  %2017 = vmatmul.mubr.bf16.gmra.mrb[84].mxu0 %v4469_v21 }
 0x18c   : > { %2024 = vmatprep.mubr.bf16.mxu0 %v4448_v4 }
 0x192   : > { %1864 = vmatmul.mubr.bf16.gmra.mrb[56].mxu1 %v4436_v37 }
 0x193   : > { %1871 = vmatprep.mubr.bf16.mxu1 %v4480_v49  ;;  %2025 = vmatmul.mubr.bf16.gmra.mrb[88].mxu0 %v4484_v13 }
 0x194   : > { %2032 = vmatprep.mubr.bf16.mxu0 %v4490_v7 }
 0x19a   : > { %1872 = vmatmul.mubr.bf16.gmra.mrb[60].mxu1 %v4448_v4 }
 0x19b   : > { %2033 = vmatmul.mubr.bf16.gmra.mrb[92].mxu0 %v4496_v1  ;;  %2073 = vmatprep.mubr.bf16.mxu1 %v4148_v39  ;;  %v3811_v39 = vld [vmem:[#allocation2 + $0x218] sm:$0xff]  }
 0x19c   : > { %2234 = vmatprep.mubr.bf16.mxu0 %v4156_v46 }
 0x1a2   : > { %2074 = vmatmul.mubr.bf16.vlgmr.msra.gmra.mrb[64].mxu1 %v4142_v34  ;;  %v3814_v34 = vld [vmem:[#allocation2 + $0x230] sm:$0xff]  }
 0x1a3   : > { %3664 = vmatpush3.bf16.msra.mxu1 %v4108_v45  ;;  %2081 = vmatprep.mubr.bf16.mxu1 %v4178_v12 }
 0x1a4   : > { %2235 = vmatmul.mubr.bf16.vlgmr.msra.gmra.mrb[96].mxu0 %v4123_v60  ;;  %3657 = vmatprep.subr.bf16.mxu1 %v3809_v43  ;;  %v3812_v60 = vld [vmem:[#allocation2 + $0x220] sm:$0xff]  }
 0x1a5   : > { %2242 = vmatprep.mubr.bf16.mxu0 %v4181_v20  ;;  %3609 = vmatpush3.bf16.msra.mxu0 %v4108_v45  ;;  %v3813_v45 = vld [vmem:[#allocation2 + $0x228] sm:$0xff]  }
 0x1a6   : > { %3610 = vmatprep.subr.bf16.mxu0 %v3809_v43 }
 0x1a7   : > { %3665 = vmatpush3.bf16.msra.mxu1 %v3809_v43 }
 0x1a8   : > { %3658 = vmatprep.subr.bf16.mxu1 %v3810_v27 }
 0x1a9   : > { %3611 = vmatpush3.bf16.msra.mxu0 %v3809_v43 }
 0x1aa   : > { %2082 = vmatmul.mubr.bf16.gmra.mrb[68].mxu1 %v4156_v46  ;;  %3612 = vmatprep.subr.bf16.mxu0 %v3810_v27  ;;  %v4547_v46 = vld [vmem:[%s4897_s4] ss:$0 sm:$0xff] }
 0x1ab   : > { %2089 = vmatprep.mubr.bf16.mxu1 %v4217_v6  ;;  %3666 = vmatpush3.bf16.msra.mxu1 %v3810_v27 }
 0x1ac   : > { %2243 = vmatmul.mubr.bf16.gmra.mrb[100].mxu0 %v4152_v40  ;;  %3659 = vmatprep.subr.bf16.mxu1 %v3811_v39  ;;  %v3815_v40 = vld [vmem:[#allocation2 + $0x238] sm:$0xff]  }
 0x1ad   : > { %2250 = vmatprep.mubr.bf16.mxu0 %v4214_v5  ;;  %3613 = vmatpush3.bf16.msra.mxu0 %v3810_v27 }
 0x1ae   : > { %3614 = vmatprep.subr.bf16.mxu0 %v3811_v39 }
 0x1af   : > { %3667 = vmatpush3.bf16.msra.mxu1 %v3811_v39 }
 0x1b0   : > { %3660 = vmatprep.subr.bf16.mxu1 %v3812_v60 }
 0x1b1   : > { %3615 = vmatpush3.bf16.msra.mxu0 %v3811_v39 }
 0x1b2   : > { %2090 = vmatmul.mubr.bf16.gmra.mrb[72].mxu1 %v4181_v20  ;;  %3616 = vmatprep.subr.bf16.mxu0 %v3812_v60 }
 0x1b3   : > { %2097 = vmatprep.mubr.bf16.mxu1 %v4247_v44  ;;  %3668 = vmatpush3.bf16.msra.mxu1 %v3812_v60 }
 0x1b4   : > { %2251 = vmatmul.mubr.bf16.gmra.mrb[104].mxu0 %v4165_v55  ;;  %3661 = vmatprep.subr.bf16.mxu1 %v3813_v45  ;;  %v1754_v55 = vadd.f32 %v4415_v18, %v4547_v46 }
 0x1b5   : > { %2258 = vmatprep.mubr.bf16.mxu0 %v4234_v30  ;;  %3617 = vmatpush3.bf16.msra.mxu0 %v3812_v60 }
 0x1b6   : > { %3618 = vmatprep.subr.bf16.mxu0 %v3813_v45 }
 0x1b7   : > { %3669 = vmatpush3.bf16.msra.mxu1 %v3813_v45 }
 0x1b8   : > { %3662 = vmatprep.subr.bf16.mxu1 %v3814_v34 }
 0x1b9   : > { %3619 = vmatpush3.bf16.msra.mxu0 %v3813_v45 }
 0x1ba   : > { %2098 = vmatmul.mubr.bf16.gmra.mrb[76].mxu1 %v4214_v5  ;;  %3620 = vmatprep.subr.bf16.mxu0 %v3814_v34 }
 0x1bb   : > { %2105 = vmatprep.mubr.bf16.mxu1 %v4266_v52  ;;  %3670 = vmatpush3.bf16.msra.mxu1 %v3814_v34 }
 0x1bc   : > { %2259 = vmatmul.mubr.bf16.gmra.mrb[108].mxu0 %v4197_v35  ;;  %3663 = vmatprep.subr.bf16.mxu1 %v3815_v40 }
 0x1bd   : > { %2266 = vmatprep.mubr.bf16.mxu0 %v4270_v15  ;;  %3621 = vmatpush3.bf16.msra.mxu0 %v3814_v34 }
 0x1be   : > { %3622 = vmatprep.subr.bf16.mxu0 %v3815_v40 }
 0x1bf   : > { %3671 = vmatpush3.bf16.msra.mxu1 %v3815_v40 }
 0x1c1   : > { %3623 = vmatpush3.bf16.msra.mxu0 %v3815_v40 }
 0x1c2   : > { %2106 = vmatmul.mubr.bf16.gmra.mrb[80].mxu1 %v4234_v30 }
 0x1c3   : > { %2113 = vmatprep.mubr.bf16.mxu1 %v4298_v8 }
 0x1c4   : > { %2267 = vmatmul.mubr.bf16.gmra.mrb[112].mxu0 %v4209_v2 }
 0x1c5   : > { %2274 = vmatprep.mubr.bf16.mxu0 %v4295_v62 }
 0x1ca   : > { %2114 = vmatmul.mubr.bf16.gmra.mrb[84].mxu1 %v4270_v15 }
 0x1cb   : > { %2121 = vmatprep.mubr.bf16.mxu1 %v4334_v56 }
 0x1cc   : > { %2275 = vmatmul.mubr.bf16.gmra.mrb[116].mxu0 %v4242_v10  ;;  %v1757_v10 = vadd.f32 %v4421_v32, %v4547_v46  ;;  %v1120_v32 = vshll.u32 %v4490_v7, 16 }
 0x1cd   : > { %2282 = vmatprep.mubr.bf16.mxu0 %v4331_v54 }
 0x1ce   : > { %v1122_v25 = vrot.slane %v1120_v32, 1 }
 0x1d0   : > { %v1123_v45 = vor.u32 %v1122_v25, %v1118_v58 }
 0x1d2   : > { %2122 = vmatmul.mubr.bf16.gmra.mrb[88].mxu1 %v4295_v62 }
 0x1d3   : > { %2129 = vmatprep.mubr.bf16.mxu1 %v4364_v50 }
 0x1d4   : > { %2283 = vmatmul.mubr.bf16.gmra.mrb[120].mxu0 %v4274_v11 }
 0x1d5   : > { %2290 = vmatprep.mubr.bf16.mxu0 %v4356_v38 }
 0x1da   : > { %2130 = vmatmul.mubr.bf16.gmra.mrb[92].mxu1 %v4331_v54 }
 0x1db   : > { %2137 = vmatprep.mubr.bf16.mxu1 %v4384_v41 }
 0x1dc   : > { %2291 = vmatmul.mubr.bf16.gmra.mrb[124].mxu0 %v4304_v29 }
 0x1dd   : > { %2298 = vmatprep.mubr.bf16.mxu0 %v4381_v48 }
 0x1e2   : > { %2138 = vmatmul.mubr.bf16.gmra.mrb[96].mxu1 %v4356_v38 }
 0x1e3   : > { %2145 = vmatprep.mubr.bf16.mxu1 %v4407_v22 }
 0x1e4   : > { %2299 = vmatmul.mubr.bf16.gmra.mrb[128].mxu0 %v4338_v19 }
 0x1e5   : > { %2306 = vmatprep.mubr.bf16.mxu0 %v4399_v51 }
 0x1ea   : > { %2146 = vmatmul.mubr.bf16.gmra.mrb[100].mxu1 %v4381_v48 }
 0x1eb   : > { %2153 = vmatprep.mubr.bf16.mxu1 %v4430_v47 }
 0x1ec   : > { %2307 = vmatmul.mubr.bf16.gmra.mrb[132].mxu0 %v4360_v17 }
 0x1ed   : > { %2314 = vmatprep.mubr.bf16.mxu0 %v4427_v3 }
 0x1f2   : > { %2154 = vmatmul.mubr.bf16.gmra.mrb[104].mxu1 %v4399_v51 }
 0x1f3   : > { %2161 = vmatprep.mubr.bf16.mxu1 %v4452_v26 }
 0x1f4   : > { %2315 = vmatmul.mubr.bf16.gmra.mrb[136].mxu0 %v4390_v16 }
 0x1f5   : > { %2322 = vmatprep.mubr.bf16.mxu0 %v4444_v63 }
 0x1f6   : > { %v3230_v20 = vpop.f32.mrb[32].mxu0 }
 0x1f7   : > { %v3231_v35 = vpop.f32.mrb[33].mxu0 }
 0x1f8   : > { %v3232_v2 = vadd.f32 %v3231_v35, %v3230_v20  ;;  %v3233_v5 = vpop.f32.mrb[34].mxu0 }
 0x1f9   : > { %v3234_v30 = vpop.f32.mrb[35].mxu0 }
 0x1fa   : > { %v4556_v15 = vadd.f32 %v3232_v2, %v1754_v55  ;;  %v3235_v11 = vadd.f32 %v3234_v30, %v3233_v5  ;;  %2162 = vmatmul.mubr.bf16.gmra.mrb[108].mxu1 %v4427_v3  ;;  %v810_v3 = vsel %vm4074_vm4, %v4471_v53, 0 }
 0x1fb   : > { %2169 = vmatprep.mubr.bf16.mxu1 %v4469_v21  ;;  %v1125_v42 = vshll.u32 %v810_v3, 16 }
 0x1fc   : > { %v4560_v62 = vadd.f32 %v3235_v11, %v1757_v10  ;;  %2323 = vmatmul.mubr.bf16.gmra.mrb[140].mxu0 %v4403_v61 }
 0x1fd   : > { %2330 = vmatprep.mubr.bf16.mxu0 %v4466_v31  ;;  %v3124_v29 = vpop.f32.mrb[4].mxu1  ;;  %v1127_v34 = vrot.slane %v1125_v42, 1 }
 0x1fe   : > { %v3125_v54 = vpop.f32.mrb[5].mxu1  ;;  %v3236_v19 = vpop.f32.mrb[36].mxu0 }
 0x1ff   : > { %v3126_v38 = vadd.f32 %v3125_v54, %v3124_v29  ;;  %v3127_v17 = vpop.f32.mrb[6].mxu1  ;;  %v3237_v48 = vpop.f32.mrb[37].mxu0  ;;  %v1128_v5 = vsel %vm811_vm5, %v1123_v45, %v1127_v34  ;;  %v1132_v54 = vrot.slane %v4490_v7, 1 }
 0x200   : > { %v3238_v16 = vadd.f32 %v3237_v48, %v3236_v19  ;;  %v3128_v51 = vpop.f32.mrb[7].mxu1  ;;  %v3239_v18 = vpop.f32.mrb[38].mxu0  ;;  %v1133_v19 = vrot.slane %v810_v3, 1 }
 0x201   : > { %v1762_v9 = vadd.f32 %v3126_v38, %v4547_v46  ;;  %v3129_v61 = vadd.f32 %v3128_v51, %v3127_v17  ;;  %v3240_v14 = vpop.f32.mrb[39].mxu0 }
 0x202   : > { %v3241_v28 = vadd.f32 %v3240_v14, %v3239_v18  ;;  %2170 = vmatmul.mubr.bf16.gmra.mrb[112].mxu1 %v4444_v63 }
 0x203   : > { %v4570_v24 = vadd.f32 %v3238_v16, %v1762_v9  ;;  %v1765_v23 = vadd.f32 %v3129_v61, %v4547_v46  ;;  %2177 = vmatprep.mubr.bf16.mxu1 %v4484_v13  ;;  %v4593_v61 = vsel %vm1052_vm6, %v1132_v54, %v1133_v19 }
 0x204   : > { %2331 = vmatmul.mubr.bf16.gmra.mrb[144].mxu0 %v4436_v37 }
 0x205   : > { %v4576_v53 = vadd.f32 %v3241_v28, %v1765_v23  ;;  %2338 = vmatprep.mubr.bf16.mxu0 %v4480_v49  ;;  %v3130_v36 = vpop.f32.mrb[8].mxu1 }
 0x206   : > { %v3131_v33 = vpop.f32.mrb[9].mxu1  ;;  %v3242_v57 = vpop.f32.mrb[40].mxu0 }
 0x207   : > { %v3132_v63 = vadd.f32 %v3131_v33, %v3130_v36  ;;  %v3133_v0 = vpop.f32.mrb[10].mxu1  ;;  %v3243_v43 = vpop.f32.mrb[41].mxu0 }
 0x208   : > { %v3244_v27 = vadd.f32 %v3243_v43, %v3242_v57  ;;  %v3134_v39 = vpop.f32.mrb[11].mxu1  ;;  %v3245_v60 = vpop.f32.mrb[42].mxu0 }
 0x209   : > { %v1770_v37 = vadd.f32 %v3132_v63, %v4547_v46  ;;  %v3135_v40 = vadd.f32 %v3134_v39, %v3133_v0  ;;  %v3246_v55 = vpop.f32.mrb[43].mxu0 }
 0x20a   : > { %v3247_v20 = vadd.f32 %v3246_v55, %v3245_v60  ;;  %2178 = vmatmul.mubr.bf16.gmra.mrb[116].mxu1 %v4466_v31 }
 0x20b   : > { %v4581_v35 = vadd.f32 %v3244_v27, %v1770_v37  ;;  %v1773_v2 = vadd.f32 %v3135_v40, %v4547_v46  ;;  %2185 = vmatprep.mubr.bf16.mxu1 %v4496_v1 }
 0x20c   : > { %2339 = vmatmul.mubr.bf16.gmra.mrb[148].mxu0 %v4448_v4 }
 0x20d   : > { %v4587_v30 = vadd.f32 %v3247_v20, %v1773_v2  ;;  %2346 = vmatprep.mubr.bf16.mxu0 %v1128_v5  ;;  %v3136_v10 = vpop.f32.mrb[12].mxu1 }
 0x20e   : > { %v3137_v11 = vpop.f32.mrb[13].mxu1  ;;  %v3248_v29 = vpop.f32.mrb[44].mxu0 }
 0x20f   : > { %v3138_v31 = vadd.f32 %v3137_v11, %v3136_v10  ;;  %v3139_v38 = vpop.f32.mrb[14].mxu1  ;;  %v3249_v17 = vpop.f32.mrb[45].mxu0 }
 0x210   : > { %v3250_v48 = vadd.f32 %v3249_v17, %v3248_v29  ;;  %v3140_v16 = vpop.f32.mrb[15].mxu1  ;;  %v3251_v51 = vpop.f32.mrb[46].mxu0 }
 0x211   : > { %v1778_v18 = vadd.f32 %v3138_v31, %v4547_v46  ;;  %v3141_v4 = vadd.f32 %v3140_v16, %v3139_v38  ;;  %v3252_v32 = vpop.f32.mrb[47].mxu0 }
 0x212   : > { %v3253_v9 = vadd.f32 %v3252_v32, %v3251_v51  ;;  %2186 = vmatmul.mubr.bf16.gmra.mrb[120].mxu1 %v4480_v49 }
 0x213   : > { %v4595_v14 = vadd.f32 %v3250_v48, %v1778_v18  ;;  %v1781_v3 = vadd.f32 %v3141_v4, %v4547_v46  ;;  %2193 = vmatprep.mubr.bf16.mxu1 %v4593_v61 }
 0x214   : > { %2347 = vmatmul.mubr.bf16.gmra.mrb[152].mxu0 %v4490_v7 }
 0x215   : > { %v4600_v28 = vadd.f32 %v3253_v9, %v1781_v3  ;;  %v3142_v23 = vpop.f32.mrb[16].mxu1  ;;  %2354 = vmatprep.mubr.bf16.mxu0 %v4090_v59  ;;  %v4915_v59 = vld [vmem:[#allocation8_spill] sm:$0xff] }
 0x216   : > { %v3143_v58 = vpop.f32.mrb[17].mxu1  ;;  %v3254_v25 = vpop.f32.mrb[48].mxu0 }
 0x217   : > { %v3144_v42 = vadd.f32 %v3143_v58, %v3142_v23  ;;  %v3145_v49 = vpop.f32.mrb[18].mxu1  ;;  %v3255_v36 = vpop.f32.mrb[49].mxu0 }
 0x218   : > { %v3256_v33 = vadd.f32 %v3255_v36, %v3254_v25  ;;  %v3146_v57 = vpop.f32.mrb[19].mxu1  ;;  %v3257_v63 = vpop.f32.mrb[50].mxu0 }
 0x219   : > { %v1786_v0 = vadd.f32 %v3144_v42, %v4547_v46  ;;  %v3147_v43 = vadd.f32 %v3146_v57, %v3145_v49  ;;  %v3258_v27 = vpop.f32.mrb[51].mxu0 }
 0x21a   : > { %v3259_v39 = vadd.f32 %v3258_v27, %v3257_v63  ;;  %2194 = vmatmul.mubr.bf16.gmra.mrb[124].mxu1 %v1128_v5 }
 0x21b   : > { %v4604_v7 = vadd.f32 %v3256_v33, %v1786_v0  ;;  %v1789_v60 = vadd.f32 %v3147_v43, %v4547_v46  ;;  %3628 = vmatprep.mubr.bf16.mxu1 %v4247_v44 }
 0x21c   : > { %2355 = vmatmul.mubr.bf16.gmra.mrb[156].mxu0 %v4915_v59 }
 0x21d   : > { %v4609_v45 = vadd.f32 %v3259_v39, %v1789_v60  ;;  %3624 = vmatprep.mubr.bf16.mxu0 %v4178_v12  ;;  %v3148_v34 = vpop.f32.mrb[20].mxu1 }
 0x21e   : > { %v3149_v37 = vpop.f32.mrb[21].mxu1  ;;  %v3260_v40 = vpop.f32.mrb[52].mxu0 }
 0x21f   : > { %v3150_v55 = vadd.f32 %v3149_v37, %v3148_v34  ;;  %v3151_v20 = vpop.f32.mrb[22].mxu1  ;;  %v3261_v2 = vpop.f32.mrb[53].mxu0 }
 0x220   : > { %v3262_v10 = vadd.f32 %v3261_v2, %v3260_v40  ;;  %v3152_v5 = vpop.f32.mrb[23].mxu1  ;;  %v3263_v11 = vpop.f32.mrb[54].mxu0 }
 0x221   : > { %v1794_v29 = vadd.f32 %v3150_v55, %v4547_v46  ;;  %v3153_v54 = vadd.f32 %v3152_v5, %v3151_v20  ;;  %v3264_v19 = vpop.f32.mrb[55].mxu0 }
 0x222   : > { %v3265_v44 = vadd.f32 %v3264_v19, %v3263_v11  ;;  %3629 = vmatmul.mubr.bf16.vlgmr.msra.gmra.mrb[128].mxu1 %v4266_v52 }
 0x223   : > { %v4614_v31 = vadd.f32 %v3262_v10, %v1794_v29  ;;  %v1797_v12 = vadd.f32 %v3153_v54, %v4547_v46  ;;  %3632 = vmatprep.mubr.bf16.mxu1 %v4298_v8 }
 0x224   : > { %3625 = vmatmul.mubr.bf16.vlgmr.msra.gmra.mrb[160].mxu0 %v4217_v6 }
 0x225   : > { %v4619_v38 = vadd.f32 %v3265_v44, %v1797_v12  ;;  %v3154_v17 = vpop.f32.mrb[24].mxu1 }
 0x226   : > { %v3155_v48 = vpop.f32.mrb[25].mxu1  ;;  %v3266_v16 = vpop.f32.mrb[56].mxu0 }
 0x227   : > { %v3156_v51 = vadd.f32 %v3155_v48, %v3154_v17  ;;  %v3157_v18 = vpop.f32.mrb[26].mxu1  ;;  %v3267_v4 = vpop.f32.mrb[57].mxu0 }
 0x228   : > { %v3268_v32 = vadd.f32 %v3267_v4, %v3266_v16  ;;  %v3158_v9 = vpop.f32.mrb[27].mxu1  ;;  %v3269_v3 = vpop.f32.mrb[58].mxu0 }
 0x229   : > { %v1802_v52 = vadd.f32 %v3156_v51, %v4547_v46  ;;  %v3159_v23 = vadd.f32 %v3158_v9, %v3157_v18  ;;  %v3270_v58 = vpop.f32.mrb[59].mxu0 }
 0x22a   : > { %v3271_v25 = vadd.f32 %v3270_v58, %v3269_v3  ;;  %3633 = vmatmul.mubr.bf16.gmra.mrb[132].mxu1 %v4334_v56 }
 0x22b   : > { %v4623_v8 = vadd.f32 %v3268_v32, %v1802_v52  ;;  %v1805_v6 = vadd.f32 %v3159_v23, %v4547_v46  ;;  %3636 = vmatprep.mubr.bf16.mxu1 %v4364_v50 }
 0x22d   : > { %v4627_v42 = vadd.f32 %v3271_v25, %v1805_v6  ;;  %v3160_v49 = vpop.f32.mrb[28].mxu1 }
 0x22e   : > { %v3161_v36 = vpop.f32.mrb[29].mxu1  ;;  %v3272_v33 = vpop.f32.mrb[60].mxu0 }
 0x22f   : > { %v3162_v57 = vadd.f32 %v3161_v36, %v3160_v49  ;;  %v3163_v63 = vpop.f32.mrb[30].mxu1  ;;  %v3273_v0 = vpop.f32.mrb[61].mxu0 }
 0x230   : > { %v3274_v43 = vadd.f32 %v3273_v0, %v3272_v33  ;;  %v3164_v27 = vpop.f32.mrb[31].mxu1  ;;  %v3275_v39 = vpop.f32.mrb[62].mxu0 }
 0x231   : > { %v1810_v60 = vadd.f32 %v3162_v57, %v4547_v46  ;;  %v3165_v56 = vadd.f32 %v3164_v27, %v3163_v63  ;;  %v3276_v59 = vpop.f32.mrb[63].mxu0 }
 0x232   : > { %v3277_v34 = vadd.f32 %v3276_v59, %v3275_v39  ;;  %3637 = vmatmul.mubr.bf16.gmra.mrb[136].mxu1 %v4384_v41 }
 0x233   : > { %v4631_v37 = vadd.f32 %v3274_v43, %v1810_v60  ;;  %v1813_v50 = vadd.f32 %v3165_v56, %v4547_v46  ;;  %3640 = vmatprep.mubr.bf16.mxu1 %v4407_v22 }
 0x235   : > { %v4635_v40 = vadd.f32 %v3277_v34, %v1813_v50  ;;  %v3166_v55 = vpop.f32.mrb[32].mxu1 }
 0x236   : > { %v3167_v20 = vpop.f32.mrb[33].mxu1  ;;  %v3278_v2 = vpop.f32.mrb[64].mxu0 }
 0x237   : > { %v3168_v10 = vadd.f32 %v3167_v20, %v3166_v55  ;;  %v3169_v5 = vpop.f32.mrb[34].mxu1  ;;  %v3279_v11 = vpop.f32.mrb[65].mxu0 }
 0x238   : > { %v3280_v29 = vadd.f32 %v3279_v11, %v3278_v2  ;;  %v3170_v54 = vpop.f32.mrb[35].mxu1  ;;  %v3281_v19 = vpop.f32.mrb[66].mxu0 }
 0x239   : > { %v1818_v44 = vadd.f32 %v3168_v10, %v4547_v46  ;;  %v3171_v41 = vadd.f32 %v3170_v54, %v3169_v5  ;;  %v3282_v12 = vpop.f32.mrb[67].mxu0 }
 0x23a   : > { %v3283_v17 = vadd.f32 %v3282_v12, %v3281_v19  ;;  %3641 = vmatmul.mubr.bf16.gmra.mrb[140].mxu1 %v4430_v47 }
 0x23b   : > { %v4639_v48 = vadd.f32 %v3280_v29, %v1818_v44  ;;  %v1821_v22 = vadd.f32 %v3171_v41, %v4547_v46  ;;  %3644 = vmatprep.mubr.bf16.mxu1 %v4452_v26 }
 0x23d   : > { %v4643_v16 = vadd.f32 %v3283_v17, %v1821_v22  ;;  %v3172_v51 = vpop.f32.mrb[36].mxu1 }
 0x23e   : > { %v3173_v18 = vpop.f32.mrb[37].mxu1  ;;  %v3284_v4 = vpop.f32.mrb[68].mxu0 }
 0x23f   : > { %v3174_v32 = vadd.f32 %v3173_v18, %v3172_v51  ;;  %v3175_v9 = vpop.f32.mrb[38].mxu1  ;;  %v3285_v3 = vpop.f32.mrb[69].mxu0  ;;  %v4916_v18 = vld [vmem:[#allocation9_spill] sm:$0xff] }
 0x240   : > { %v3286_v52 = vadd.f32 %v3285_v3, %v3284_v4  ;;  %v3176_v23 = vpop.f32.mrb[39].mxu1  ;;  %v3287_v58 = vpop.f32.mrb[70].mxu0 }
 0x241   : > { %v1826_v25 = vadd.f32 %v3174_v32, %v4547_v46  ;;  %v3177_v47 = vadd.f32 %v3176_v23, %v3175_v9  ;;  %v3288_v6 = vpop.f32.mrb[71].mxu0 }
 0x242   : > { %v3289_v49 = vadd.f32 %v3288_v6, %v3287_v58  ;;  %3645 = vmatmul.mubr.bf16.gmra.mrb[144].mxu1 %v4469_v21 }
 0x243   : > { %v4647_v36 = vadd.f32 %v3286_v52, %v1826_v25  ;;  %v1829_v26 = vadd.f32 %v3177_v47, %v4547_v46  ;;  %3648 = vmatprep.mubr.bf16.mxu1 %v4484_v13 }
 0x245   : > { %v4651_v33 = vadd.f32 %v3289_v49, %v1829_v26  ;;  %v3178_v57 = vpop.f32.mrb[40].mxu1 }
 0x246   : > { %v3179_v63 = vpop.f32.mrb[41].mxu1  ;;  %v3290_v0 = vpop.f32.mrb[72].mxu0 }
 0x247   : > { %v3180_v43 = vadd.f32 %v3179_v63, %v3178_v57  ;;  %v3181_v27 = vpop.f32.mrb[42].mxu1  ;;  %v3291_v39 = vpop.f32.mrb[73].mxu0 }
 0x248   : > { %v3292_v60 = vadd.f32 %v3291_v39, %v3290_v0  ;;  %v3182_v56 = vpop.f32.mrb[43].mxu1  ;;  %v3293_v59 = vpop.f32.mrb[74].mxu0 }
 0x249   : > { %v1834_v34 = vadd.f32 %v3180_v43, %v4547_v46  ;;  %v3183_v21 = vadd.f32 %v3182_v56, %v3181_v27  ;;  %v3294_v50 = vpop.f32.mrb[75].mxu0 }
 0x24a   : > { %v3295_v55 = vadd.f32 %v3294_v50, %v3293_v59  ;;  %3649 = vmatmul.mubr.bf16.gmra.mrb[148].mxu1 %v4496_v1 }
 0x24b   : > { %v4655_v20 = vadd.f32 %v3292_v60, %v1834_v34  ;;  %v1837_v13 = vadd.f32 %v3183_v21, %v4547_v46  ;;  %3652 = vmatprep.mubr.bf16.mxu1 %v4593_v61 }
 0x24d   : > { %v4659_v2 = vadd.f32 %v3295_v55, %v1837_v13  ;;  %v3184_v10 = vpop.f32.mrb[44].mxu1 }
 0x24e   : > { %v3185_v5 = vpop.f32.mrb[45].mxu1  ;;  %v3296_v11 = vpop.f32.mrb[76].mxu0 }
 0x24f   : > { %v3186_v29 = vadd.f32 %v3185_v5, %v3184_v10  ;;  %v3187_v54 = vpop.f32.mrb[46].mxu1  ;;  %v3297_v19 = vpop.f32.mrb[77].mxu0 }
 0x250   : > { %v3298_v44 = vadd.f32 %v3297_v19, %v3296_v11  ;;  %v3188_v41 = vpop.f32.mrb[47].mxu1  ;;  %v3299_v12 = vpop.f32.mrb[78].mxu0 }
 0x251   : > { %v1842_v17 = vadd.f32 %v3186_v29, %v4547_v46  ;;  %v3189_v1 = vadd.f32 %v3188_v41, %v3187_v54  ;;  %v3300_v22 = vpop.f32.mrb[79].mxu0 }
 0x252   : > { %v3301_v51 = vadd.f32 %v3300_v22, %v3299_v12  ;;  %3653 = vmatmul.mubr.bf16.gmra.mrb[152].mxu1 %v4916_v18 }
 0x253   : > { %v4663_v4 = vadd.f32 %v3298_v44, %v1842_v17  ;;  %v1845_v61 = vadd.f32 %v3189_v1, %v4547_v46 }
 0x255   : > { %v4666_v32 = vadd.f32 %v3301_v51, %v1845_v61  ;;  %v3190_v9 = vpop.f32.mrb[48].mxu1 }
 0x256   : > { %v3191_v3 = vpop.f32.mrb[49].mxu1  ;;  %v3302_v52 = vpop.f32.mrb[80].mxu0 }
 0x257   : > { %v3192_v23 = vadd.f32 %v3191_v3, %v3190_v9  ;;  %v3193_v58 = vpop.f32.mrb[50].mxu1  ;;  %v3303_v25 = vpop.f32.mrb[81].mxu0 }
 0x258   : > { %v3304_v47 = vadd.f32 %v3303_v25, %v3302_v52  ;;  %v3194_v6 = vpop.f32.mrb[51].mxu1  ;;  %v3305_v49 = vpop.f32.mrb[82].mxu0 }
 0x259   : > { %v1850_v26 = vadd.f32 %v3192_v23, %v4547_v46  ;;  %v3195_v57 = vadd.f32 %v3194_v6, %v3193_v58  ;;  %v3306_v63 = vpop.f32.mrb[83].mxu0 }
 0x25a   : > { %v3307_v0 = vadd.f32 %v3306_v63, %v3305_v49 }
 0x25b   : > { %v4669_v43 = vadd.f32 %v3304_v47, %v1850_v26  ;;  %v1853_v27 = vadd.f32 %v3195_v57, %v4547_v46 }
 0x25d   : > { %v4672_v39 = vadd.f32 %v3307_v0, %v1853_v27  ;;  %v3196_v60 = vpop.f32.mrb[52].mxu1 }
 0x25e   : > { %v3197_v56 = vpop.f32.mrb[53].mxu1  ;;  %v3308_v59 = vpop.f32.mrb[84].mxu0 }
 0x25f   : > { %v3198_v34 = vadd.f32 %v3197_v56, %v3196_v60  ;;  %v3199_v21 = vpop.f32.mrb[54].mxu1  ;;  %v3309_v50 = vpop.f32.mrb[85].mxu0 }
 0x260   : > { %v3310_v55 = vadd.f32 %v3309_v50, %v3308_v59  ;;  %v3200_v13 = vpop.f32.mrb[55].mxu1  ;;  %v3311_v10 = vpop.f32.mrb[86].mxu0 }
 0x261   : > { %v1858_v5 = vadd.f32 %v3198_v34, %v4547_v46  ;;  %v3201_v11 = vadd.f32 %v3200_v13, %v3199_v21  ;;  %v3312_v29 = vpop.f32.mrb[87].mxu0 }
 0x262   : > { %v3313_v54 = vadd.f32 %v3312_v29, %v3311_v10 }
 0x263   : > { %v4675_v19 = vadd.f32 %v3310_v55, %v1858_v5  ;;  %v1861_v44 = vadd.f32 %v3201_v11, %v4547_v46 }
 0x265   : > { %v4678_v41 = vadd.f32 %v3313_v54, %v1861_v44  ;;  %v3202_v12 = vpop.f32.mrb[56].mxu1 }
 0x266   : > { %v3203_v17 = vpop.f32.mrb[57].mxu1  ;;  %v3314_v1 = vpop.f32.mrb[88].mxu0 }
 0x267   : > { %v3204_v22 = vadd.f32 %v3203_v17, %v3202_v12  ;;  %v3205_v51 = vpop.f32.mrb[58].mxu1  ;;  %v3315_v18 = vpop.f32.mrb[89].mxu0 }
 0x268   : > { %v3316_v61 = vadd.f32 %v3315_v18, %v3314_v1  ;;  %v3206_v9 = vpop.f32.mrb[59].mxu1  ;;  %v3317_v3 = vpop.f32.mrb[90].mxu0 }
 0x269   : > { %v1866_v52 = vadd.f32 %v3204_v22, %v4547_v46  ;;  %v3207_v23 = vadd.f32 %v3206_v9, %v3205_v51  ;;  %v3318_v58 = vpop.f32.mrb[91].mxu0 }
 0x26a   : > { %v3319_v25 = vadd.f32 %v3318_v58, %v3317_v3 }
 0x26b   : > { %v4681_v47 = vadd.f32 %v3316_v61, %v1866_v52  ;;  %v1869_v6 = vadd.f32 %v3207_v23, %v4547_v46 }
 0x26d   : > { %v4684_v49 = vadd.f32 %v3319_v25, %v1869_v6  ;;  %v3208_v26 = vpop.f32.mrb[60].mxu1 }
 0x26e   : > { %v3209_v57 = vpop.f32.mrb[61].mxu1  ;;  %v3320_v63 = vpop.f32.mrb[92].mxu0 }
 0x26f   : > { %v3210_v0 = vadd.f32 %v3209_v57, %v3208_v26  ;;  %v3211_v27 = vpop.f32.mrb[62].mxu1  ;;  %v3321_v60 = vpop.f32.mrb[93].mxu0 }
 0x270   : > { %v3322_v56 = vadd.f32 %v3321_v60, %v3320_v63  ;;  %v3212_v59 = vpop.f32.mrb[63].mxu1  ;;  %v3323_v34 = vpop.f32.mrb[94].mxu0 }
 0x271   : > { %v1874_v21 = vadd.f32 %v3210_v0, %v4547_v46  ;;  %v3213_v50 = vadd.f32 %v3212_v59, %v3211_v27  ;;  %v3324_v55 = vpop.f32.mrb[95].mxu0 }
 0x272   : > { %v3325_v13 = vadd.f32 %v3324_v55, %v3323_v34 }
 0x273   : > { %v4687_v10 = vadd.f32 %v3322_v56, %v1874_v21  ;;  %v1877_v5 = vadd.f32 %v3213_v50, %v4547_v46 }
 0x275   : > { %v4690_v11 = vadd.f32 %v3325_v13, %v1877_v5  ;;  %v3342_v29 = vpop.f32.mrb[64].mxu1 }
 0x276   : > { %v3343_v54 = vpop.f32.mrb[65].mxu1 }
 0x277   : > { %v3344_v44 = vadd.f32 %v3343_v54, %v3342_v29  ;;  %v3454_v12 = vpop.f32.mrb[96].mxu0  ;;  %v3345_v17 = vpop.f32.mrb[66].mxu1 }
 0x278   : > { %v3455_v1 = vpop.f32.mrb[97].mxu0  ;;  %v3346_v22 = vpop.f32.mrb[67].mxu1 }
 0x279   : > { %v2076_v51 = vadd.f32 %v3344_v44, %v4556_v15  ;;  %v3456_v18 = vadd.f32 %v3455_v1, %v3454_v12  ;;  %v3347_v61 = vadd.f32 %v3346_v22, %v3345_v17  ;;  %v3457_v9 = vpop.f32.mrb[98].mxu0 }
 0x27a   : > { %v3458_v3 = vpop.f32.mrb[99].mxu0 }
 0x27b   : > { %v2079_v52 = vadd.f32 %v3347_v61, %v4560_v62  ;;  %v3459_v23 = vadd.f32 %v3458_v3, %v3457_v9  ;;  %v4694_v58 = vadd.f32 %v3456_v18, %v2076_v51 }
 0x27d   : > { %v3348_v46 = vpop.f32.mrb[68].mxu1  ;;  %v4696_v25 = vadd.f32 %v3459_v23, %v2079_v52 }
 0x27e   : > { %v3349_v6 = vpop.f32.mrb[69].mxu1 }
 0x27f   : > { %v3350_v26 = vadd.f32 %v3349_v6, %v3348_v46  ;;  %v3460_v57 = vpop.f32.mrb[100].mxu0  ;;  %v3351_v63 = vpop.f32.mrb[70].mxu1 }
 0x280   : > { %v3461_v0 = vpop.f32.mrb[101].mxu0  ;;  %v3352_v27 = vpop.f32.mrb[71].mxu1 }
 0x281   : > { %v2084_v15 = vadd.f32 %v3350_v26, %v4570_v24  ;;  %v3462_v60 = vadd.f32 %v3461_v0, %v3460_v57  ;;  %v3353_v56 = vadd.f32 %v3352_v27, %v3351_v63  ;;  %v3463_v59 = vpop.f32.mrb[102].mxu0 }
 0x282   : > { %v3464_v34 = vpop.f32.mrb[103].mxu0 }
 0x283   : > { %v2087_v62 = vadd.f32 %v3353_v56, %v4576_v53  ;;  %v3465_v21 = vadd.f32 %v3464_v34, %v3463_v59  ;;  %v4700_v50 = vadd.f32 %v3462_v60, %v2084_v15 }
 0x285   : > { %v3354_v55 = vpop.f32.mrb[72].mxu1  ;;  %v4702_v13 = vadd.f32 %v3465_v21, %v2087_v62 }
 0x286   : > { %v3355_v5 = vpop.f32.mrb[73].mxu1 }
 0x287   : > { %v3356_v29 = vadd.f32 %v3355_v5, %v3354_v55  ;;  %v3466_v54 = vpop.f32.mrb[104].mxu0  ;;  %v3357_v44 = vpop.f32.mrb[74].mxu1 }
 0x288   : > { %v3467_v12 = vpop.f32.mrb[105].mxu0  ;;  %v3358_v17 = vpop.f32.mrb[75].mxu1 }
 0x289   : > { %v2092_v24 = vadd.f32 %v3356_v29, %v4581_v35  ;;  %v3468_v1 = vadd.f32 %v3467_v12, %v3466_v54  ;;  %v3359_v22 = vadd.f32 %v3358_v17, %v3357_v44  ;;  %v3469_v51 = vpop.f32.mrb[106].mxu0 }
 0x28a   : > { %v3470_v18 = vpop.f32.mrb[107].mxu0 }
 0x28b   : > { %v2095_v53 = vadd.f32 %v3359_v22, %v4587_v30  ;;  %v3471_v61 = vadd.f32 %v3470_v18, %v3469_v51  ;;  %v4706_v9 = vadd.f32 %v3468_v1, %v2092_v24 }
 0x28d   : > { %v3360_v3 = vpop.f32.mrb[76].mxu1  ;;  %v4708_v52 = vadd.f32 %v3471_v61, %v2095_v53 }
 0x28e   : > { %v3361_v23 = vpop.f32.mrb[77].mxu1 }
 0x28f   : > { %v3362_v46 = vadd.f32 %v3361_v23, %v3360_v3  ;;  %v3472_v6 = vpop.f32.mrb[108].mxu0  ;;  %v3363_v26 = vpop.f32.mrb[78].mxu1 }
 0x290   : > { %v3473_v57 = vpop.f32.mrb[109].mxu0  ;;  %v3364_v63 = vpop.f32.mrb[79].mxu1 }
 0x291   : > { %v2100_v35 = vadd.f32 %v3362_v46, %v4595_v14  ;;  %v3474_v0 = vadd.f32 %v3473_v57, %v3472_v6  ;;  %v3365_v27 = vadd.f32 %v3364_v63, %v3363_v26  ;;  %v3475_v15 = vpop.f32.mrb[110].mxu0 }
 0x292   : > { %v3476_v60 = vpop.f32.mrb[111].mxu0 }
 0x293   : > { %v2103_v30 = vadd.f32 %v3365_v27, %v4600_v28  ;;  %v3477_v56 = vadd.f32 %v3476_v60, %v3475_v15  ;;  %v4712_v59 = vadd.f32 %v3474_v0, %v2100_v35 }
 0x295   : > { %v3366_v34 = vpop.f32.mrb[80].mxu1  ;;  %v4714_v62 = vadd.f32 %v3477_v56, %v2103_v30 }
 0x296   : > { %v3367_v21 = vpop.f32.mrb[81].mxu1 }
 0x297   : > { %v3368_v55 = vadd.f32 %v3367_v21, %v3366_v34  ;;  %v3478_v5 = vpop.f32.mrb[112].mxu0  ;;  %v3369_v29 = vpop.f32.mrb[82].mxu1 }
 0x298   : > { %v3479_v54 = vpop.f32.mrb[113].mxu0  ;;  %v3370_v44 = vpop.f32.mrb[83].mxu1 }
 0x299   : > { %v2108_v14 = vadd.f32 %v3368_v55, %v4604_v7  ;;  %v3480_v12 = vadd.f32 %v3479_v54, %v3478_v5  ;;  %v3371_v17 = vadd.f32 %v3370_v44, %v3369_v29  ;;  %v3481_v24 = vpop.f32.mrb[114].mxu0 }
 0x29a   : > { %v3482_v1 = vpop.f32.mrb[115].mxu0 }
 0x29b   : > { %v2111_v28 = vadd.f32 %v3371_v17, %v4609_v45  ;;  %v3483_v22 = vadd.f32 %v3482_v1, %v3481_v24  ;;  %v4718_v51 = vadd.f32 %v3480_v12, %v2108_v14 }
 0x29d   : > { %v3372_v18 = vpop.f32.mrb[84].mxu1  ;;  %v4720_v53 = vadd.f32 %v3483_v22, %v2111_v28 }
 0x29e   : > { %v3373_v61 = vpop.f32.mrb[85].mxu1 }
 0x29f   : > { %v3374_v3 = vadd.f32 %v3373_v61, %v3372_v18  ;;  %v3484_v23 = vpop.f32.mrb[116].mxu0  ;;  %v3375_v46 = vpop.f32.mrb[86].mxu1 }
 0x2a0   : > { %v3485_v6 = vpop.f32.mrb[117].mxu0  ;;  %v3376_v26 = vpop.f32.mrb[87].mxu1 }
 0x2a1   : > { %v2116_v7 = vadd.f32 %v3374_v3, %v4614_v31  ;;  %v3486_v57 = vadd.f32 %v3485_v6, %v3484_v23  ;;  %v3377_v63 = vadd.f32 %v3376_v26, %v3375_v46  ;;  %v3487_v35 = vpop.f32.mrb[118].mxu0 }
 0x2a2   : > { %v3488_v0 = vpop.f32.mrb[119].mxu0 }
 0x2a3   : > { %v2119_v45 = vadd.f32 %v3377_v63, %v4619_v38  ;;  %v3489_v27 = vadd.f32 %v3488_v0, %v3487_v35  ;;  %v4724_v15 = vadd.f32 %v3486_v57, %v2116_v7 }
 0x2a5   : > { %v3378_v60 = vpop.f32.mrb[88].mxu1  ;;  %v4726_v30 = vadd.f32 %v3489_v27, %v2119_v45 }
 0x2a6   : > { %v3379_v56 = vpop.f32.mrb[89].mxu1 }
 0x2a7   : > { %v3380_v34 = vadd.f32 %v3379_v56, %v3378_v60  ;;  %v3490_v21 = vpop.f32.mrb[120].mxu0  ;;  %v3381_v55 = vpop.f32.mrb[90].mxu1 }
 0x2a8   : > { %v3491_v5 = vpop.f32.mrb[121].mxu0  ;;  %v3382_v29 = vpop.f32.mrb[91].mxu1 }
 0x2a9   : > { %v2124_v31 = vadd.f32 %v3380_v34, %v4623_v8  ;;  %v3492_v54 = vadd.f32 %v3491_v5, %v3490_v21  ;;  %v3383_v44 = vadd.f32 %v3382_v29, %v3381_v55  ;;  %v3493_v14 = vpop.f32.mrb[122].mxu0 }
 0x2aa   : > { %v3494_v12 = vpop.f32.mrb[123].mxu0 }
 0x2ab   : > { %v2127_v38 = vadd.f32 %v3383_v44, %v4627_v42  ;;  %v3495_v17 = vadd.f32 %v3494_v12, %v3493_v14  ;;  %v4730_v24 = vadd.f32 %v3492_v54, %v2124_v31 }
 0x2ad   : > { %v3384_v1 = vpop.f32.mrb[92].mxu1  ;;  %v4732_v28 = vadd.f32 %v3495_v17, %v2127_v38 }
 0x2ae   : > { %v3385_v22 = vpop.f32.mrb[93].mxu1 }
 0x2af   : > { %v3386_v18 = vadd.f32 %v3385_v22, %v3384_v1  ;;  %v3496_v61 = vpop.f32.mrb[124].mxu0  ;;  %v3387_v3 = vpop.f32.mrb[94].mxu1 }
 0x2b0   : > { %v3497_v23 = vpop.f32.mrb[125].mxu0  ;;  %v3388_v46 = vpop.f32.mrb[95].mxu1 }
 0x2b1   : > { %v2132_v8 = vadd.f32 %v3386_v18, %v4631_v37  ;;  %v3498_v6 = vadd.f32 %v3497_v23, %v3496_v61  ;;  %v3389_v26 = vadd.f32 %v3388_v46, %v3387_v3  ;;  %v3499_v7 = vpop.f32.mrb[126].mxu0 }
 0x2b2   : > { %v3500_v57 = vpop.f32.mrb[127].mxu0 }
 0x2b3   : > { %v2135_v42 = vadd.f32 %v3389_v26, %v4635_v40  ;;  %v3501_v63 = vadd.f32 %v3500_v57, %v3499_v7  ;;  %v4736_v35 = vadd.f32 %v3498_v6, %v2132_v8 }
 0x2b5   : > { %v3390_v0 = vpop.f32.mrb[96].mxu1  ;;  %v4738_v45 = vadd.f32 %v3501_v63, %v2135_v42 }
 0x2b6   : > { %v3391_v27 = vpop.f32.mrb[97].mxu1 }
 0x2b7   : > { %v3392_v60 = vadd.f32 %v3391_v27, %v3390_v0  ;;  %v3502_v56 = vpop.f32.mrb[128].mxu0  ;;  %v3393_v34 = vpop.f32.mrb[98].mxu1 }
 0x2b8   : > { %v3503_v21 = vpop.f32.mrb[129].mxu0  ;;  %v3394_v55 = vpop.f32.mrb[99].mxu1 }
 0x2b9   : > { %v2140_v37 = vadd.f32 %v3392_v60, %v4639_v48  ;;  %v3504_v5 = vadd.f32 %v3503_v21, %v3502_v56  ;;  %v3395_v29 = vadd.f32 %v3394_v55, %v3393_v34  ;;  %v3505_v31 = vpop.f32.mrb[130].mxu0 }
 0x2ba   : > { %v3506_v54 = vpop.f32.mrb[131].mxu0 }
 0x2bb   : > { %v2143_v40 = vadd.f32 %v3395_v29, %v4643_v16  ;;  %v3507_v44 = vadd.f32 %v3506_v54, %v3505_v31  ;;  %v4742_v14 = vadd.f32 %v3504_v5, %v2140_v37 }
 0x2bd   : > { %v3396_v12 = vpop.f32.mrb[100].mxu1  ;;  %v4744_v38 = vadd.f32 %v3507_v44, %v2143_v40 }
 0x2be   : > { %v3397_v17 = vpop.f32.mrb[101].mxu1 }
 0x2bf   : > { %v3398_v1 = vadd.f32 %v3397_v17, %v3396_v12  ;;  %v3508_v22 = vpop.f32.mrb[132].mxu0  ;;  %v3399_v18 = vpop.f32.mrb[102].mxu1 }
 0x2c0   : > { %v3509_v61 = vpop.f32.mrb[133].mxu0  ;;  %v3400_v3 = vpop.f32.mrb[103].mxu1 }
 0x2c1   : > { %v2148_v48 = vadd.f32 %v3398_v1, %v4647_v36  ;;  %v3510_v23 = vadd.f32 %v3509_v61, %v3508_v22  ;;  %v3401_v46 = vadd.f32 %v3400_v3, %v3399_v18  ;;  %v3511_v8 = vpop.f32.mrb[134].mxu0 }
 0x2c2   : > { %v3512_v6 = vpop.f32.mrb[135].mxu0 }
 0x2c3   : > { %v2151_v16 = vadd.f32 %v3401_v46, %v4651_v33  ;;  %v3513_v26 = vadd.f32 %v3512_v6, %v3511_v8  ;;  %v4748_v7 = vadd.f32 %v3510_v23, %v2148_v48 }
 0x2c5   : > { %v3402_v57 = vpop.f32.mrb[104].mxu1  ;;  %v4750_v42 = vadd.f32 %v3513_v26, %v2151_v16 }
 0x2c6   : > { %v3403_v63 = vpop.f32.mrb[105].mxu1 }
 0x2c7   : > { %v3404_v0 = vadd.f32 %v3403_v63, %v3402_v57  ;;  %v3514_v27 = vpop.f32.mrb[136].mxu0  ;;  %v3405_v60 = vpop.f32.mrb[106].mxu1 }
 0x2c8   : > { %v3515_v56 = vpop.f32.mrb[137].mxu0  ;;  %v3406_v34 = vpop.f32.mrb[107].mxu1 }
 0x2c9   : > { %v2156_v36 = vadd.f32 %v3404_v0, %v4655_v20  ;;  %v3516_v21 = vadd.f32 %v3515_v56, %v3514_v27  ;;  %v3407_v55 = vadd.f32 %v3406_v34, %v3405_v60  ;;  %v3517_v37 = vpop.f32.mrb[138].mxu0 }
 0x2ca   : > { %v3518_v5 = vpop.f32.mrb[139].mxu0 }
 0x2cb   : > { %v2159_v33 = vadd.f32 %v3407_v55, %v4659_v2  ;;  %v3519_v29 = vadd.f32 %v3518_v5, %v3517_v37  ;;  %v4754_v31 = vadd.f32 %v3516_v21, %v2156_v36 }
 0x2cd   : > { %v3408_v54 = vpop.f32.mrb[108].mxu1  ;;  %v4756_v40 = vadd.f32 %v3519_v29, %v2159_v33 }
 0x2ce   : > { %v3409_v44 = vpop.f32.mrb[109].mxu1 }
 0x2cf   : > { %v3410_v12 = vadd.f32 %v3409_v44, %v3408_v54  ;;  %v3520_v17 = vpop.f32.mrb[140].mxu0  ;;  %v3411_v1 = vpop.f32.mrb[110].mxu1 }
 0x2d0   : > { %v3521_v22 = vpop.f32.mrb[141].mxu0  ;;  %v3412_v18 = vpop.f32.mrb[111].mxu1 }
 0x2d1   : > { %v2164_v20 = vadd.f32 %v3410_v12, %v4663_v4  ;;  %v3522_v61 = vadd.f32 %v3521_v22, %v3520_v17  ;;  %v3413_v3 = vadd.f32 %v3412_v18, %v3411_v1  ;;  %v3523_v48 = vpop.f32.mrb[142].mxu0 }
 0x2d2   : > { %v3524_v23 = vpop.f32.mrb[143].mxu0 }
 0x2d3   : > { %v2167_v2 = vadd.f32 %v3413_v3, %v4666_v32  ;;  %v3525_v46 = vadd.f32 %v3524_v23, %v3523_v48  ;;  %v4760_v8 = vadd.f32 %v3522_v61, %v2164_v20 }
 0x2d5   : > { %v3414_v6 = vpop.f32.mrb[112].mxu1  ;;  %v4762_v16 = vadd.f32 %v3525_v46, %v2167_v2 }
 0x2d6   : > { %v3415_v26 = vpop.f32.mrb[113].mxu1 }
 0x2d7   : > { %v3416_v57 = vadd.f32 %v3415_v26, %v3414_v6  ;;  %v3526_v63 = vpop.f32.mrb[144].mxu0  ;;  %v3417_v0 = vpop.f32.mrb[114].mxu1 }
 0x2d8   : > { %v3527_v27 = vpop.f32.mrb[145].mxu0  ;;  %v3418_v60 = vpop.f32.mrb[115].mxu1 }
 0x2d9   : > { %v2172_v4 = vadd.f32 %v3416_v57, %v4669_v43  ;;  %v3528_v56 = vadd.f32 %v3527_v27, %v3526_v63  ;;  %v3419_v34 = vadd.f32 %v3418_v60, %v3417_v0  ;;  %v3529_v36 = vpop.f32.mrb[146].mxu0 }
 0x2da   : > { %v3530_v21 = vpop.f32.mrb[147].mxu0 }
 0x2db   : > { %v2175_v32 = vadd.f32 %v3419_v34, %v4672_v39  ;;  %v3531_v55 = vadd.f32 %v3530_v21, %v3529_v36  ;;  %v4766_v37 = vadd.f32 %v3528_v56, %v2172_v4 }
 0x2dd   : > { %v3420_v5 = vpop.f32.mrb[116].mxu1  ;;  %v4768_v33 = vadd.f32 %v3531_v55, %v2175_v32 }
 0x2de   : > { %v3421_v29 = vpop.f32.mrb[117].mxu1 }
 0x2df   : > { %v3422_v54 = vadd.f32 %v3421_v29, %v3420_v5  ;;  %v3532_v44 = vpop.f32.mrb[148].mxu0  ;;  %v3423_v12 = vpop.f32.mrb[118].mxu1 }
 0x2e0   : > { %v3533_v17 = vpop.f32.mrb[149].mxu0  ;;  %v3424_v1 = vpop.f32.mrb[119].mxu1 }
 0x2e1   : > { %v2180_v43 = vadd.f32 %v3422_v54, %v4675_v19  ;;  %v3534_v22 = vadd.f32 %v3533_v17, %v3532_v44  ;;  %v3425_v18 = vadd.f32 %v3424_v1, %v3423_v12  ;;  %v3535_v20 = vpop.f32.mrb[150].mxu0 }
 0x2e2   : > { %v3536_v61 = vpop.f32.mrb[151].mxu0 }
 0x2e3   : > { %v2183_v39 = vadd.f32 %v3425_v18, %v4678_v41  ;;  %v3537_v3 = vadd.f32 %v3536_v61, %v3535_v20  ;;  %v4772_v48 = vadd.f32 %v3534_v22, %v2180_v43 }
 0x2e5   : > { %v3426_v23 = vpop.f32.mrb[120].mxu1  ;;  %v4774_v2 = vadd.f32 %v3537_v3, %v2183_v39 }
 0x2e6   : > { %v3427_v46 = vpop.f32.mrb[121].mxu1 }
 0x2e7   : > { %v3428_v6 = vadd.f32 %v3427_v46, %v3426_v23  ;;  %v3538_v26 = vpop.f32.mrb[152].mxu0  ;;  %v3429_v57 = vpop.f32.mrb[122].mxu1 }
 0x2e8   : > { %v3539_v63 = vpop.f32.mrb[153].mxu0  ;;  %v3430_v0 = vpop.f32.mrb[123].mxu1 }
 0x2e9   : > { %v2188_v19 = vadd.f32 %v3428_v6, %v4681_v47  ;;  %v3540_v27 = vadd.f32 %v3539_v63, %v3538_v26  ;;  %v3431_v60 = vadd.f32 %v3430_v0, %v3429_v57  ;;  %v3541_v4 = vpop.f32.mrb[154].mxu0 }
 0x2ea   : > { %v3542_v56 = vpop.f32.mrb[155].mxu0 }
 0x2eb   : > { %v2191_v41 = vadd.f32 %v3431_v60, %v4684_v49  ;;  %v3543_v34 = vadd.f32 %v3542_v56, %v3541_v4  ;;  %v4778_v36 = vadd.f32 %v3540_v27, %v2188_v19 }
 0x2ed   : > { %v3432_v21 = vpop.f32.mrb[124].mxu1  ;;  %v4780_v32 = vadd.f32 %v3543_v34, %v2191_v41 }
 0x2ee   : > { %v3433_v55 = vpop.f32.mrb[125].mxu1 }
 0x2ef   : > { %v3434_v5 = vadd.f32 %v3433_v55, %v3432_v21  ;;  %v3435_v29 = vpop.f32.mrb[126].mxu1  ;;  %v3544_v54 = vpop.f32.mrb[156].mxu0 }
 0x2f0   : > { %v3436_v44 = vpop.f32.mrb[127].mxu1  ;;  %v3545_v12 = vpop.f32.mrb[157].mxu0 }
 0x2f1   : > { %v2196_v47 = vadd.f32 %v3434_v5, %v4687_v10  ;;  %v3437_v17 = vadd.f32 %v3436_v44, %v3435_v29  ;;  %v3546_v1 = vadd.f32 %v3545_v12, %v3544_v54  ;;  %v3547_v43 = vpop.f32.mrb[158].mxu0 }
 0x2f2   : > { %v3548_v49 = vpop.f32.mrb[159].mxu0 }
 0x2f3   : > { %v2199_v22 = vadd.f32 %v3437_v17, %v4690_v11  ;;  %v3549_v18 = vadd.f32 %v3548_v49, %v3547_v43  ;;  %v4784_v20 = vadd.f32 %v3546_v1, %v2196_v47 }
 0x2f5   : > { %v3630_v61 = vpop.f32.mrb[128].mxu1  ;;  %v4787_v39 = vadd.f32 %v3549_v18, %v2199_v22 }
 0x2f6   : > { %v2422_v3 = vadd.f32 %v3630_v61, %v4712_v59  ;;  %v2413_v23 = vpop.f32.mrb[129].mxu1 }
 0x2f7   : > { %v3626_v46 = vpop.f32.mrb[160].mxu0  ;;  %v2414_v10 = vadd.f32 %v2413_v23, %v4706_v9  ;;  %v3631_v6 = vpop.f32.mrb[130].mxu1 }
 0x2f8   : > { %v2406_v26 = vadd.f32 %v3626_v46, %v4700_v50  ;;  %v2397_v57 = vpop.f32.mrb[161].mxu0  ;;  %v2425_v11 = vadd.f32 %v3631_v6, %v4714_v62  ;;  %v2416_v63 = vpop.f32.mrb[131].mxu1  ;;  %v2530_v60 = vmax.f32 %v2422_v3, 0.0 }
 0x2f9   : > { %v2398_v0 = vadd.f32 %v2397_v57, %v4694_v58  ;;  %v3627_v19 = vpop.f32.mrb[162].mxu0  ;;  %v2417_v27 = vadd.f32 %v2416_v63, %v4708_v52  ;;  %v2528_v9 = vmax.f32 %v2414_v10, 0.0 }
 0x2fa   : > { %v2531_v59 = vmax.f32 %v2425_v11, 0.0  ;;  %v2409_v4 = vadd.f32 %v3627_v19, %v4702_v13  ;;  %v2400_v56 = vpop.f32.mrb[163].mxu0  ;;  %v2526_v34 = vmax.f32 %v2406_v26, 0.0 }
 0x2fb   : > { %v2529_v41 = vmax.f32 %v2417_v27, 0.0  ;;  %v2401_v50 = vadd.f32 %v2400_v56, %v4696_v25  ;;  %v2524_v5 = vmax.f32 %v2398_v0, 0.0 }
 0x2fc   : > { %v3008_v21 = vpack.c.bf16 %v2531_v59, %v2530_v60  ;;  %v2527_v55 = vmax.f32 %v2409_v4, 0.0 }
 0x2fd   : > { %v3003_v62 = vpack.c.bf16 %v2529_v41, %v2528_v9  ;;  %v2525_v29 = vmax.f32 %v2401_v50, 0.0  ;;  %v3634_v54 = vpop.f32.mrb[132].mxu1 }
 0x2fe   : > { %3072 = vst [vmem:[%s4799_s23 + $0x18] sm:$0xff] %v3008_v21   ;;  %v2998_v58 = vpack.c.bf16 %v2527_v55, %v2526_v34  ;;  %v2438_v13 = vadd.f32 %v3634_v54, %v4724_v15  ;;  %v2429_v52 = vpop.f32.mrb[133].mxu1 }
 0x2ff   : > { %3071 = vst [vmem:[%s4799_s23 + $0x10] sm:$0xff] %v3003_v62   ;;  %v2993_v25 = vpack.c.bf16 %v2525_v29, %v2524_v5  ;;  %v2430_v44 = vadd.f32 %v2429_v52, %v4718_v51  ;;  %v3635_v12 = vpop.f32.mrb[134].mxu1 }
 0x300   : > { %3070 = vst [vmem:[%s4799_s23 + $0x8] sm:$0xff] %v2998_v58   ;;  %v2441_v47 = vadd.f32 %v3635_v12, %v4726_v30  ;;  %v2432_v17 = vpop.f32.mrb[135].mxu1  ;;  %v2534_v43 = vmax.f32 %v2438_v13, 0.0 }
 0x301   : > { %2994 = vst [vmem:[%s4799_s23] sm:$0xff] %v2993_v25   ;;  %v2433_v1 = vadd.f32 %v2432_v17, %v4720_v53  ;;  %v2532_v22 = vmax.f32 %v2430_v44, 0.0 }
 0x302   : > { %v2535_v49 = vmax.f32 %v2441_v47, 0.0 }
 0x303   : > { %v2533_v18 = vmax.f32 %v2433_v1, 0.0 }
 0x304   : > { %v3018_v15 = vpack.c.bf16 %v2535_v49, %v2534_v43 }
 0x305   : > { %v3013_v61 = vpack.c.bf16 %v2533_v18, %v2532_v22  ;;  %v3638_v3 = vpop.f32.mrb[136].mxu1 }
 0x306   : > { %3074 = vst [vmem:[%s4799_s23 + $0x28] sm:$0xff] %v3018_v15   ;;  %v2454_v51 = vadd.f32 %v3638_v3, %v4736_v35  ;;  %v2445_v23 = vpop.f32.mrb[137].mxu1 }
 0x307   : > { %3073 = vst [vmem:[%s4799_s23 + $0x20] sm:$0xff] %v3013_v61   ;;  %v2446_v30 = vadd.f32 %v2445_v23, %v4730_v24  ;;  %v3639_v46 = vpop.f32.mrb[138].mxu1 }
 0x308   : > { %v2457_v10 = vadd.f32 %v3639_v46, %v4738_v45  ;;  %v2448_v53 = vpop.f32.mrb[139].mxu1  ;;  %v2538_v26 = vmax.f32 %v2454_v51, 0.0 }
 0x309   : > { %v2449_v6 = vadd.f32 %v2448_v53, %v4732_v28  ;;  %v2536_v11 = vmax.f32 %v2446_v30, 0.0 }
 0x30a   : > { %v2539_v57 = vmax.f32 %v2457_v10, 0.0 }
 0x30b   : > { %v2537_v63 = vmax.f32 %v2449_v6, 0.0 }
 0x30c   : > { %v3028_v0 = vpack.c.bf16 %v2539_v57, %v2538_v26 }
 0x30d   : > { %v3023_v19 = vpack.c.bf16 %v2537_v63, %v2536_v11  ;;  %v3642_v27 = vpop.f32.mrb[140].mxu1 }
 0x30e   : > { %3076 = vst [vmem:[%s4799_s23 + $0x38] sm:$0xff] %v3028_v0   ;;  %v2470_v35 = vadd.f32 %v3642_v27, %v4748_v7  ;;  %v2461_v60 = vpop.f32.mrb[141].mxu1 }
 0x30f   : > { %3075 = vst [vmem:[%s4799_s23 + $0x30] sm:$0xff] %v3023_v19   ;;  %v2462_v24 = vadd.f32 %v2461_v60, %v4742_v14  ;;  %v3643_v45 = vpop.f32.mrb[142].mxu1 }
 0x310   : > { %v2473_v59 = vadd.f32 %v3643_v45, %v4750_v42  ;;  %v2464_v28 = vpop.f32.mrb[143].mxu1  ;;  %v2542_v56 = vmax.f32 %v2470_v35, 0.0 }
 0x311   : > { %v2465_v4 = vadd.f32 %v2464_v28, %v4744_v38  ;;  %v2540_v41 = vmax.f32 %v2462_v24, 0.0 }
 0x312   : > { %v2543_v9 = vmax.f32 %v2473_v59, 0.0 }
 0x313   : > { %v2541_v50 = vmax.f32 %v2465_v4, 0.0 }
 0x314   : > { %v3038_v34 = vpack.c.bf16 %v2543_v9, %v2542_v56 }
 0x315   : > { %v3033_v21 = vpack.c.bf16 %v2541_v50, %v2540_v41  ;;  %v3646_v55 = vpop.f32.mrb[144].mxu1 }
 0x316   : > { %3078 = vst [vmem:[%s4799_s23 + $0x48] sm:$0xff] %v3038_v34   ;;  %v2486_v7 = vadd.f32 %v3646_v55, %v4760_v8  ;;  %v2477_v5 = vpop.f32.mrb[145].mxu1 }
 0x317   : > { %3077 = vst [vmem:[%s4799_s23 + $0x40] sm:$0xff] %v3033_v21   ;;  %v2478_v14 = vadd.f32 %v2477_v5, %v4754_v31  ;;  %v3647_v42 = vpop.f32.mrb[146].mxu1 }
 0x318   : > { %v2489_v62 = vadd.f32 %v3647_v42, %v4762_v16  ;;  %v2480_v38 = vpop.f32.mrb[147].mxu1  ;;  %v2546_v54 = vmax.f32 %v2486_v7, 0.0 }
 0x319   : > { %v2481_v29 = vadd.f32 %v2480_v38, %v4756_v40  ;;  %v2544_v13 = vmax.f32 %v2478_v14, 0.0 }
 0x31a   : > { %v2547_v58 = vmax.f32 %v2489_v62, 0.0 }
 0x31b   : > { %v2545_v52 = vmax.f32 %v2481_v29, 0.0 }
 0x31c   : > { %v3048_v25 = vpack.c.bf16 %v2547_v58, %v2546_v54 }
 0x31d   : > { %v3043_v44 = vpack.c.bf16 %v2545_v52, %v2544_v13  ;;  %v3650_v12 = vpop.f32.mrb[148].mxu1 }
 0x31e   : > { %3080 = vst [vmem:[%s4799_s23 + $0x58] sm:$0xff] %v3048_v25   ;;  %v2502_v8 = vadd.f32 %v3650_v12, %v4772_v48  ;;  %v2493_v47 = vpop.f32.mrb[149].mxu1 }
 0x31f   : > { %3079 = vst [vmem:[%s4799_s23 + $0x50] sm:$0xff] %v3043_v44   ;;  %v2494_v31 = vadd.f32 %v2493_v47, %v4766_v37  ;;  %v3651_v16 = vpop.f32.mrb[150].mxu1 }
 0x320   : > { %v2505_v17 = vadd.f32 %v3651_v16, %v4774_v2  ;;  %v2496_v40 = vpop.f32.mrb[151].mxu1  ;;  %v2550_v43 = vmax.f32 %v2502_v8, 0.0 }
 0x321   : > { %v2497_v1 = vadd.f32 %v2496_v40, %v4768_v33  ;;  %v2548_v22 = vmax.f32 %v2494_v31, 0.0 }
 0x322   : > { %v2551_v49 = vmax.f32 %v2505_v17, 0.0 }
 0x323   : > { %v2549_v18 = vmax.f32 %v2497_v1, 0.0 }
 0x324   : > { %v3058_v15 = vpack.c.bf16 %v2551_v49, %v2550_v43 }
 0x325   : > { %v3053_v61 = vpack.c.bf16 %v2549_v18, %v2548_v22  ;;  %v3654_v48 = vpop.f32.mrb[152].mxu1 }
 0x326   : > { %3082 = vst [vmem:[%s4799_s23 + $0x68] sm:$0xff] %v3058_v15   ;;  %v2518_v3 = vadd.f32 %v3654_v48, %v4784_v20  ;;  %v2509_v51 = vpop.f32.mrb[153].mxu1 }
 0x327   : > { %3081 = vst [vmem:[%s4799_s23 + $0x60] sm:$0xff] %v3053_v61   ;;  %v2510_v37 = vadd.f32 %v2509_v51, %v4778_v36  ;;  %v3655_v2 = vpop.f32.mrb[154].mxu1 }
 0x328   : > { %v2521_v33 = vadd.f32 %v3655_v2, %v4787_v39  ;;  %v2512_v23 = vpop.f32.mrb[155].mxu1  ;;  %v2554_v46 = vmax.f32 %v2518_v3, 0.0 }
 0x329   : > { %v2513_v30 = vadd.f32 %v2512_v23, %v4780_v32  ;;  %v2552_v53 = vmax.f32 %v2510_v37, 0.0 }
 0x32a   : > { %v2555_v10 = vmax.f32 %v2521_v33, 0.0 }
 0x32b   : > { %v2553_v20 = vmax.f32 %v2513_v30, 0.0 }
 0x32c   : > { %v3068_v6 = vpack.c.bf16 %v2555_v10, %v2554_v46 }
 0x32d   : > { %v3063_v36 = vpack.c.bf16 %v2553_v20, %v2552_v53 }
 0x32e   : > { %3084 = vst [vmem:[%s4799_s23 + $0x78] sm:$0xff] %v3068_v6  }
 0x32f   : > { %3083 = vst [vmem:[%s4799_s23 + $0x70] sm:$0xff] %v3063_v36  }
 0x330   : > { %3857 = shalt.err (!%p3854_p7)
}
 0x331   : > { %s3858_s12 = scalar_lea.hbm %s4844_s8, 2048  ;;  %s3862_s15 = scalar_lea.hbm %s4898_s5, 4096 }
 0x332   : > { %p3859_p8 = scmp.ne.s32.totalorder %s4844_s8, %s3858_s12  ;;  %p3863_p1 = scmp.lt.u32.totalorder %s4844_s8, %s4898_s5 }
 0x333   : > { %p3864_p0 = scmp.lt.u32.totalorder %s3862_s15, %s3858_s12  ;;  %p3866_p6 = scmp.lt.u32.totalorder %s3858_s12, %s4844_s8 }
 0x334   : > { %p3860_p11 = pnand %p3859_p8, %p4917_p9 }
 0x335   : > { %p3865_p5 = por %p3864_p0, %p3863_p1 }
 0x336   : > { %p3861_p13 = pneg %p3860_p11 }
 0x337   : > { %p3867_p10 = por %p3866_p6, %p3865_p5 }
 0x339   : > { %p3868_p12 = pnand %p3867_p10, %p3861_p13 }
 0x33b   : > { %3871 = shalt.err (!%p3868_p12)
}
 0x33c   : > { %s3917_s23 = smov 64   ;;  %s3918_s25 = smov 4  }
 0x33d   : > { %3677 = dma.vmem_to_hbm [thread:$0]  (%p4917_p9), %s4846_s26, 2048, %s4844_s8, %s4852_s22, %s3917_s23, %s3917_s23, %s3918_s25  }
 0x33e PF: > { %p3689_p2 = scmp.ge.s32.totalorder %s3910_s21, 2  ;;  %s2745_s6 = sand.u32 1, %s3898_s18  }
 0x33f   : > { %p4918_p3 = scmp.ne.s32.totalorder %s4905_s29, 0  ;;  %s2746_s9 = scalar_lea.sflag [#allocation4], %s2745_s6 }
 0x341   : > { %p3684_p4 = pnand %p3689_p2, %p4918_p3 }
 0x343   : > { %3893 = dma.done.wait (!%p3684_p4), %s2746_s9, 2048  }
 0x344   : > { %3895 = vsyncadd (!%p3684_p4), %s2746_s9, 4294965248  ;;  %p16_p7 = scmp.ge.s32.totalorder %s3974_s24, 4   ;;  %s4919_s18 = smov %s3902_s19 }
 0x345   : > { %s4920_s19 = smov %s3906_s20  ;;  %s4921_s20 = smov %s3985_s27 }
 0x346   : > { %s4922_s21 = smov %s3974_s24  ;;  %18 = sbr.rel (!%p16_p7) target bundleno = 4 (0x4), region = 80 }
 0x34d   :  { %2751 = vsyncpa [#allocation3], 1 }
 0x34e   :  { %2753 = vsyncpa [#allocation3 + $0x1], 1 }
 0x34f   :  { %2754 = vsyncpa [#allocation4], 1 }
 0x350   :  { %2756 = vsyncpa [#allocation4 + $0x1], 1 }

</bundles_post_ra>
